<compile_context>
chip_gen: v7x
topology: tpu7x:2x2x1
jax: 0.10.0
libtpu: 0.0.40
codegen_flags: <defaults>
</compile_context>

<pallas_src>
import functools

import jax
import jax.numpy as jnp
from jax.experimental import pallas as pl
from jax.experimental.pallas import tpu as pltpu


LANE = 128
_VMEM_LIMIT = 32 * 1024 * 1024   # safe scoped limit on v5e / v6e / v7x


def _round_up(v, m):
    return ((v + m - 1) // m) * m


# ----------------------------------------------------------------------------
# GEMM + bias (+ ReLU): tiled over M, lane-dense output (Cout padded to 128)
# ----------------------------------------------------------------------------

def _matmul_bias_kernel(x_ref, w_ref, b_ref, o_ref, *, relu):
    """(tm, K) @ (K, 128) + (1, 128), bf16 MXU inputs, fp32 accumulate."""
    acc = jnp.dot(x_ref[...], w_ref[...], preferred_element_type=jnp.float32)
    acc = acc + b_ref[...]
    if relu:
        acc = jnp.maximum(acc, 0.0)
    o_ref[...] = acc.astype(o_ref.dtype)


def matmul_bias(x, w, b, relu=False, tm=256):
    """x: (M, K) f32, w: (K, NP) f32 (NP multiple of 128), b: (1, NP) f32."""
    M, K = x.shape
    NP = w.shape[1]
    tm = min(tm, _round_up(M, 8))
    Mp = _round_up(M, tm)
    if Mp != M:
        x = jnp.pad(x, ((0, Mp - M), (0, 0)))
    # bf16 feeds the MXU at 2x rate (v6e/v7x) and halves HBM->VMEM DMA bytes;
    # accumulation stays fp32, bias-add / ReLU stay fp32 on the VPU.
    xb = x.astype(jnp.bfloat16)
    wb = w.astype(jnp.bfloat16)
    out = pl.pallas_call(
        functools.partial(_matmul_bias_kernel, relu=relu),
        out_shape=jax.ShapeDtypeStruct((Mp, NP), jnp.float32),
        grid=(Mp // tm,),
        in_specs=[pl.BlockSpec((tm, K), lambda i: (i, 0)),
                  pl.BlockSpec((K, NP), lambda i: (0, 0)),    # resident weights
                  pl.BlockSpec((1, NP), lambda i: (0, 0))],   # resident bias
        out_specs=pl.BlockSpec((tm, NP), lambda i: (i, 0)),
        compiler_params=pltpu.CompilerParams(
            dimension_semantics=("parallel",),                 # megacore on v7x
            vmem_limit_bytes=_VMEM_LIMIT),
    )(xb, wb, b)
    return out[:M]


# ----------------------------------------------------------------------------
# Vector quantizer: tiled over M, codebook + norms resident, per-tile loss
# partials (summed in the wrapper so the M axis stays "parallel")
# ----------------------------------------------------------------------------

def _vq_kernel(z_ref, cb_ref, c2_ref, q_ref, lp_ref, *, m_valid):
    """z_ref: (tm, D) latents, cb_ref: (K, D) codebook, c2_ref: (1, K) |c_k|^2.

    q_ref : (tm, D) quantized output (nearest-code lookup)
    lp_ref: (1, 8, 128) per-tile partial sum of squared error (broadcast scalar)
    """
    z = z_ref[...]                                              # (tm, D) f32
    cb = cb_ref[...]                                            # (K, D)  f32
    c2 = c2_ref[...]                                            # (1, K)  f32
    tm = z.shape[0]
    K = cb.shape[0]

    # argmin_k |z - c_k|^2 == argmin_k (|c_k|^2 - 2 <z, c_k>)  (|z|^2 is constant
    # per row, so it is dropped; |c_k|^2 is hoisted to the wrapper).
    dots = jax.lax.dot_general(
        z, cb, (((1,), (1,)), ((), ())),
        preferred_element_type=jnp.float32)                     # (tm, K)
    dist = c2 - 2.0 * dots                                      # (tm, K)

    # argmin with first-occurrence tie-break (matches torch.argmin).
    min_d = jnp.min(dist, axis=1, keepdims=True)                # (tm, 1)
    iota = jax.lax.broadcasted_iota(jnp.int32, (tm, K), 1)      # (tm, K)
    masked = jnp.where(dist == min_d, iota, jnp.int32(K))
    idx = jnp.min(masked, axis=1, keepdims=True)                # (tm, 1)

    # Codebook lookup via one-hot GEMM against the resident codebook (exact).
    # TODO(synk): lane-dense (tm*D/128, 128) output slab / in-kernel index
    # gather skipped; store volume here (tm*D) is negligible vs the (tm, K)
    # distance work.
    onehot = (iota == idx).astype(jnp.float32)                  # (tm, K)
    quant = jnp.dot(onehot, cb, preferred_element_type=jnp.float32)  # (tm, D)
    q_ref[...] = quant.astype(q_ref.dtype)

    # Partial sum of squared error; mask rows that are only padding.
    row0 = pl.program_id(0) * tm
    rows = row0 + jax.lax.broadcasted_iota(jnp.int32, (tm, 1), 0)
    valid = rows < m_valid                                      # (tm, 1)
    diff = jnp.where(valid, quant - z, 0.0)
    sumsq = jnp.sum(diff * diff)
    lp_ref[...] = jnp.broadcast_to(sumsq, lp_ref.shape).astype(jnp.float32)


def vector_quantize(z_flat, codebook, commitment_cost, tm=256):
    M, D = z_flat.shape
    K = codebook.shape[0]
    tm = min(tm, _round_up(M, 8))
    Mp = _round_up(M, tm)
    zp = jnp.pad(z_flat, ((0, Mp - M), (0, 0))) if Mp != M else z_flat
    # Hoist the codebook norms out of the kernel (loop-invariant across M tiles).
    c2 = jnp.sum(codebook * codebook, axis=1).reshape(1, K)
    G = Mp // tm

    quant, partials = pl.pallas_call(
        functools.partial(_vq_kernel, m_valid=M),
        out_shape=(jax.ShapeDtypeStruct((Mp, D), jnp.float32),
                   jax.ShapeDtypeStruct((G, 8, 128), jnp.float32)),
        grid=(G,),
        in_specs=[pl.BlockSpec((tm, D), lambda i: (i, 0)),
                  pl.BlockSpec((K, D), lambda i: (0, 0)),      # resident codebook
                  pl.BlockSpec((1, K), lambda i: (0, 0))],     # resident norms
        out_specs=(pl.BlockSpec((tm, D), lambda i: (i, 0)),
                   pl.BlockSpec((1, 8, 128), lambda i: (i, 0, 0))),
        compiler_params=pltpu.CompilerParams(
            dimension_semantics=("parallel",),                  # megacore-safe
            vmem_limit_bytes=_VMEM_LIMIT),
    )(zp, codebook, c2)

    # Forward pass: q_latent_loss == e_latent_loss == MSE(quantized, z).
    loss = (1.0 + commitment_cost) * jnp.sum(partials[:, 0, 0]) / (M * D)
    return quant[:M], loss


# ----------------------------------------------------------------------------
# Conv / conv-transpose glue (NHWC im2col in XLA, GEMM in Pallas)
# TODO(synk): patch extraction / zero-dilated transpose input still materialize
# in HBM; fusing them into the Pallas GEMM (kh*kw accumulation grid) is the
# next step.
# ----------------------------------------------------------------------------

def _im2col_nhwc(x, kh, kw, stride, pad):
    N, H, W, C = x.shape
    xp = jnp.pad(x, ((0, 0), (pad, pad), (pad, pad), (0, 0)))
    Ho = (H + 2 * pad - kh) // stride + 1
    Wo = (W + 2 * pad - kw) // stride + 1
    cols = []
    for i in range(kh):
        for j in range(kw):
            cols.append(xp[:, i:i + stride * Ho:stride, j:j + stride * Wo:stride, :])
    patches = jnp.stack(cols, axis=3)                 # (N, Ho, Wo, kh*kw, C)
    return patches.reshape(N * Ho * Wo, kh * kw * C), Ho, Wo


def conv2d_nhwc(x, w, b, stride, pad, relu=False):
    """x: (N,H,W,Cin) NHWC; w: (Cout,Cin,kh,kw) torch layout; b: (Cout,)."""
    N = x.shape[0]
    Cout, Cin, kh, kw = w.shape
    patches, Ho, Wo = _im2col_nhwc(x, kh, kw, stride, pad)     # (M, kh*kw*Cin)
    w_mat = jnp.transpose(w, (2, 3, 1, 0)).reshape(kh * kw * Cin, Cout)
    NP = _round_up(max(Cout, LANE), LANE)                      # lane-dense out
    w_pad = jnp.zeros((w_mat.shape[0], NP), w_mat.dtype).at[:, :Cout].set(w_mat)
    b_pad = jnp.zeros((1, NP), jnp.float32).at[:, :Cout].set(b.reshape(1, Cout))
    out = matmul_bias(patches, w_pad, b_pad, relu=relu)        # (M, NP)
    return out[:, :Cout].reshape(N, Ho, Wo, Cout)


def conv_transpose2d_nhwc(x, w, b, stride, pad, relu=False):
    """x: (N,H,W,Cin) NHWC; w: (Cin,Cout,kh,kw) torch ConvTranspose2d layout."""
    N, H, W, Cin = x.shape
    _, Cout, kh, kw = w.shape
    Hd, Wd = (H - 1) * stride + 1, (W - 1) * stride + 1
    xd = jnp.zeros((N, Hd, Wd, Cin), x.dtype).at[:, ::stride, ::stride, :].set(x)
    # Equivalent stride-1 conv with spatially-flipped, channel-swapped weight.
    w_conv = jnp.transpose(jnp.flip(w, axis=(2, 3)), (1, 0, 2, 3))  # (Cout,Cin,kh,kw)
    return conv2d_nhwc(xd, w_conv, b, stride=1, pad=kh - 1 - pad, relu=relu)


# ----------------------------------------------------------------------------
# VQVAE forward (encoder -> VectorQuantizer(1024, 4, 0.25) -> decoder)
# ----------------------------------------------------------------------------

NUM_EMBEDDINGS = 1024
EMBEDDING_DIM = 4
COMMITMENT_COST = 0.25
HIDDEN = 16


def init_params(key):
    ks = jax.random.split(key, 9)
    s = 0.05
    params = {
        # encoder: Conv(3->16, k4 s2 p1) ReLU, Conv(16->4, k4 s2 p1)
        "enc_w1": s * jax.random.normal(ks[0], (HIDDEN, 3, 4, 4), jnp.float32),
        "enc_b1": jnp.zeros((HIDDEN,), jnp.float32),
        "enc_w2": s * jax.random.normal(ks[1], (EMBEDDING_DIM, HIDDEN, 4, 4), jnp.float32),
        "enc_b2": jnp.zeros((EMBEDDING_DIM,), jnp.float32),
        # codebook: (K, D), uniform(-1/K, 1/K) like the standard VQ init
        "codebook": jax.random.uniform(
            ks[2], (NUM_EMBEDDINGS, EMBEDDING_DIM), jnp.float32,
            minval=-1.0 / NUM_EMBEDDINGS, maxval=1.0 / NUM_EMBEDDINGS),
        # decoder: ConvT(4->16, k4 s2 p1) ReLU, ConvT(16->3, k4 s2 p1)
        "dec_w1": s * jax.random.normal(ks[3], (EMBEDDING_DIM, HIDDEN, 4, 4), jnp.float32),
        "dec_b1": jnp.zeros((HIDDEN,), jnp.float32),
        "dec_w2": s * jax.random.normal(ks[4], (HIDDEN, 3, 4, 4), jnp.float32),
        "dec_b2": jnp.zeros((3,), jnp.float32),
    }
    return params


def vqvae_forward(params, x):
    # NCHW -> NHWC once (channels on the lane axis for every layer below).
    xh = jnp.transpose(x, (0, 2, 3, 1))

    # --- encoder ---
    h = conv2d_nhwc(xh, params["enc_w1"], params["enc_b1"], stride=2, pad=1, relu=True)
    z = conv2d_nhwc(h, params["enc_w2"], params["enc_b2"], stride=2, pad=1, relu=False)
    # z: (N, Hl, Wl, D)

    # --- vector quantizer bottleneck ---
    N, Hl, Wl, D = z.shape
    z_flat = z.reshape(N * Hl * Wl, D)
    quant_flat, loss = vector_quantize(z_flat, params["codebook"], COMMITMENT_COST)
    # straight-through estimator is identity in the forward pass
    quant = quant_flat.reshape(N, Hl, Wl, D)

    # --- decoder ---
    d = conv_transpose2d_nhwc(quant, params["dec_w1"], params["dec_b1"],
                              stride=2, pad=1, relu=True)
    out = conv_transpose2d_nhwc(d, params["dec_w2"], params["dec_b2"],
                                stride=2, pad=1, relu=False)
    # NHWC -> NCHW once at the exit.
    return jnp.transpose(out, (0, 3, 1, 2)), loss


if __name__ == "__main__":
    key = jax.random.PRNGKey(0)
    pkey, xkey = jax.random.split(key)
    params = init_params(pkey)
    x = jax.random.normal(xkey, (2, 3, 16, 16), jnp.float32)

    out, loss = jax.jit(vqvae_forward)(params, x)
    jax.block_until_ready((out, loss))

    assert out.shape == x.shape, out.shape
    assert loss.shape == (), loss.shape
    assert bool(jnp.isfinite(loss)), loss
    assert bool(jnp.all(jnp.isfinite(out)))
    print("KERNEL_OK")
</pallas_src>

<mosaic_0001>
module attributes {stable_mosaic.version = 11 : i64} {
  func.func @_matmul_bias_kernel(%arg0: i32, %arg1: memref<128x48xbf16, #tpu.memory_space<vmem>>, %arg2: memref<48x128xbf16, #tpu.memory_space<vmem>>, %arg3: memref<1x128xf32, #tpu.memory_space<vmem>>, %arg4: memref<128x128xf32, #tpu.memory_space<vmem>>) attributes {dimension_semantics = [#tpu.dimension_semantics<parallel>], iteration_bounds = array<i64: 1>, scalar_prefetch = 0 : i64, scratch_operands = 0 : i64, tpu.core_type = #tpu.core_type<tc>, window_params = [{transform_indices = @transform_0, window_bounds = array<i64: 128, 48>}, {pipeline_mode = #tpu.pipeline_mode<synchronous>, transform_indices = @transform_1, window_bounds = array<i64: 48, 128>}, {pipeline_mode = #tpu.pipeline_mode<synchronous>, transform_indices = @transform_2, window_bounds = array<i64: 1, 128>}, {transform_indices = @transform_3, window_bounds = array<i64: 128, 128>}]} {
    %c0 = arith.constant 0 : index
    %c0_0 = arith.constant 0 : index
    %0 = vector.load %arg1[%c0, %c0_0] : memref<128x48xbf16, #tpu.memory_space<vmem>>, vector<128x48xbf16>
    %c0_1 = arith.constant 0 : index
    %c0_2 = arith.constant 0 : index
    %1 = vector.load %arg2[%c0_1, %c0_2] : memref<48x128xbf16, #tpu.memory_space<vmem>>, vector<48x128xbf16>
    %cst = arith.constant dense<0.000000e+00> : vector<128x128xf32>
    %2 = tpu.matmul %0, %1, %cst {dimension_numbers = #tpu.dot_dimension_numbers<[1], [0], [0], [1], [0, 0, 1, 1], [], []>} : vector<128x48xbf16>, vector<48x128xbf16>, vector<128x128xf32> -> vector<128x128xf32>
    %c0_3 = arith.constant 0 : index
    %c0_4 = arith.constant 0 : index
    %3 = vector.load %arg3[%c0_3, %c0_4] : memref<1x128xf32, #tpu.memory_space<vmem>>, vector<1x128xf32>
    %4 = vector.broadcast %3 : vector<1x128xf32> to vector<128x128xf32>
    %5 = arith.addf %2, %4 : vector<128x128xf32>
    %cst_5 = arith.constant 0.000000e+00 : f32
    %6 = vector.broadcast %cst_5 : f32 to vector<128x128xf32>
    %7 = arith.maximumf %5, %6 : vector<128x128xf32>
    %c0_6 = arith.constant 0 : index
    %c0_7 = arith.constant 0 : index
    %8 = vector.load %arg4[%c0_6, %c0_7] : memref<128x128xf32, #tpu.memory_space<vmem>>, vector<128x128xf32>
    tpu.vector_store %arg4[%c0_6, %c0_7], %7 {strides = array<i32>} : memref<128x128xf32, #tpu.memory_space<vmem>>, vector<128x128xf32>,
    return
  }
  func.func @transform_0(%arg0: i32) -> (i32, i32) {
    %c0_i32 = arith.constant 0 : i32
    %c0_i32_0 = arith.constant 0 : i32
    return %arg0, %c0_i32 : i32, i32
  }
  func.func @transform_1(%arg0: i32) -> (i32, i32) {
    %c0_i32 = arith.constant 0 : i32
    %c0_i32_0 = arith.constant 0 : i32
    %c0_i32_1 = arith.constant 0 : i32
    return %c0_i32, %c0_i32_0 : i32, i32
  }
  func.func @transform_2(%arg0: i32) -> (i32, i32) {
    %c0_i32 = arith.constant 0 : i32
    %c0_i32_0 = arith.constant 0 : i32
    %c0_i32_1 = arith.constant 0 : i32
    return %c0_i32, %c0_i32_0 : i32, i32
  }
  func.func @transform_3(%arg0: i32) -> (i32, i32) {
    %c0_i32 = arith.constant 0 : i32
    %c0_i32_0 = arith.constant 0 : i32
    return %arg0, %c0_i32 : i32, i32
  }
}

module attributes {stable_mosaic.version = 11 : i64} {
  func.func @_vq_kernel(%arg0: i32, %arg1: memref<32x4xf32, #tpu.memory_space<vmem>>, %arg2: memref<1024x4xf32, #tpu.memory_space<vmem>>, %arg3: memref<1x1024xf32, #tpu.memory_space<vmem>>, %arg4: memref<32x4xf32, #tpu.memory_space<vmem>>, %arg5: memref<1x8x128xf32, #tpu.memory_space<vmem>>) attributes {dimension_semantics = [#tpu.dimension_semantics<parallel>], iteration_bounds = array<i64: 1>, scalar_prefetch = 0 : i64, scratch_operands = 0 : i64, tpu.core_type = #tpu.core_type<tc>, window_params = [{transform_indices = @transform_0, window_bounds = array<i64: 32, 4>}, {pipeline_mode = #tpu.pipeline_mode<synchronous>, transform_indices = @transform_1, window_bounds = array<i64: 1024, 4>}, {pipeline_mode = #tpu.pipeline_mode<synchronous>, transform_indices = @transform_2, window_bounds = array<i64: 1, 1024>}, {transform_indices = @transform_3, window_bounds = array<i64: 32, 4>}, {transform_indices = @transform_4, window_bounds = array<i64: 1, 8, 128>}]} {
    %c0 = arith.constant 0 : index
    %c0_0 = arith.constant 0 : index
    %0 = vector.load %arg1[%c0, %c0_0] : memref<32x4xf32, #tpu.memory_space<vmem>>, vector<32x4xf32>
    %c0_1 = arith.constant 0 : index
    %c0_2 = arith.constant 0 : index
    %1 = vector.load %arg2[%c0_1, %c0_2] : memref<1024x4xf32, #tpu.memory_space<vmem>>, vector<1024x4xf32>
    %c0_3 = arith.constant 0 : index
    %c0_4 = arith.constant 0 : index
    %2 = vector.load %arg3[%c0_3, %c0_4] : memref<1x1024xf32, #tpu.memory_space<vmem>>, vector<1x1024xf32>
    %cst = arith.constant dense<0.000000e+00> : vector<32x1024xf32>
    %3 = tpu.matmul %0, %1, %cst {dimension_numbers = #tpu.dot_dimension_numbers<[1], [1], [0], [0], [0, 0, 1, 0], [], []>} : vector<32x4xf32>, vector<1024x4xf32>, vector<32x1024xf32> -> vector<32x1024xf32>
    %cst_5 = arith.constant 2.000000e+00 : f32
    %4 = vector.broadcast %cst_5 : f32 to vector<32x1024xf32>
    %5 = arith.mulf %4, %3 : vector<32x1024xf32>
    %6 = vector.broadcast %2 : vector<1x1024xf32> to vector<32x1024xf32>
    %7 = arith.subf %6, %5 : vector<32x1024xf32>
    %cst_6 = arith.constant dense<0x7F800000> : vector<32xf32>
    %8 = vector.multi_reduction <minimumf>, %7, %cst_6 [1] : vector<32x1024xf32> to vector<32xf32>
    %9 = vector.shape_cast %8 : vector<32xf32> to vector<32x1xf32>
    %10 = tpu.iota {dimensions = array<i32: 1>} : vector<32x1024xi32>
    %11 = vector.broadcast %9 : vector<32x1xf32> to vector<32x1024xf32>
    %12 = arith.cmpf oeq, %7, %11 : vector<32x1024xf32>
    %c1024_i32 = arith.constant 1024 : i32
    %13 = vector.broadcast %c1024_i32 : i32 to vector<32x1024xi32>
    %14 = arith.select %12, %10, %13 : vector<32x1024xi1>, vector<32x1024xi32>
    %cst_7 = arith.constant dense<2147483647> : vector<32xi32>
    %15 = vector.multi_reduction <minsi>, %14, %cst_7 [1] : vector<32x1024xi32> to vector<32xi32>
    %16 = vector.shape_cast %15 : vector<32xi32> to vector<32x1xi32>
    %17 = vector.broadcast %16 : vector<32x1xi32> to vector<32x1024xi32>
    %18 = arith.cmpi eq, %10, %17 : vector<32x1024xi32>
    %19 = arith.extui %18 : vector<32x1024xi1> to vector<32x1024xi32>
    %20 = arith.sitofp %19 : vector<32x1024xi32> to vector<32x1024xf32>
    %cst_8 = arith.constant dense<0.000000e+00> : vector<32x4xf32>
    %21 = tpu.matmul %20, %1, %cst_8 {dimension_numbers = #tpu.dot_dimension_numbers<[1], [0], [0], [1], [0, 0, 1, 1], [], []>} : vector<32x1024xf32>, vector<1024x4xf32>, vector<32x4xf32> -> vector<32x4xf32>
    %c0_9 = arith.constant 0 : index
    %c0_10 = arith.constant 0 : index
    %22 = vector.load %arg4[%c0_9, %c0_10] : memref<32x4xf32, #tpu.memory_space<vmem>>, vector<32x4xf32>
    tpu.vector_store %arg4[%c0_9, %c0_10], %21 {strides = array<i32>} : memref<32x4xf32, #tpu.memory_space<vmem>>, vector<32x4xf32>,
    %c32_i32 = arith.constant 32 : i32
    %23 = arith.muli %arg0, %c32_i32 : i32
    %24 = tpu.iota {dimensions = array<i32: 0>} : vector<32x1xi32>
    %25 = vector.broadcast %23 : i32 to vector<32x1xi32>
    %26 = arith.addi %25, %24 : vector<32x1xi32>
    %c32_i32_11 = arith.constant 32 : i32
    %27 = vector.broadcast %c32_i32_11 : i32 to vector<32x1xi32>
    %28 = arith.cmpi slt, %26, %27 : vector<32x1xi32>
    %29 = arith.subf %21, %0 : vector<32x4xf32>
    %cst_12 = arith.constant 0.000000e+00 : f32
    %30 = vector.shape_cast %28 : vector<32x1xi1> to vector<32x1xi1>
    %31 = vector.broadcast %30 : vector<32x1xi1> to vector<32x4xi1>
    %32 = vector.broadcast %cst_12 : f32 to vector<32x4xf32>
    %33 = arith.select %31, %29, %32 : vector<32x4xi1>, vector<32x4xf32>
    %34 = arith.mulf %33, %33 : vector<32x4xf32>
    %35 = vector.shape_cast %34 : vector<32x4xf32> to vector<1x32x4xf32>
    %cst_13 = arith.constant dense<0.000000e+00> : vector<1xf32>
    %36 = vector.multi_reduction <add>, %35, %cst_13 [1, 2] : vector<1x32x4xf32> to vector<1xf32>
    %37 = vector.shape_cast %36 : vector<1xf32> to vector<1x1x1xf32>
    %38 = vector.extract %37[0, 0, 0] : f32 from vector<1x1x1xf32>
    %39 = vector.broadcast %38 : f32 to vector<1x8x128xf32>
    %c0_14 = arith.constant 0 : index
    %c0_15 = arith.constant 0 : index
    %c0_16 = arith.constant 0 : index
    %40 = vector.load %arg5[%c0_14, %c0_15, %c0_16] : memref<1x8x128xf32, #tpu.memory_space<vmem>>, vector<1x8x128xf32>
    tpu.vector_store %arg5[%c0_14, %c0_15, %c0_16], %39 {strides = array<i32>} : memref<1x8x128xf32, #tpu.memory_space<vmem>>, vector<1x8x128xf32>,
    return
  }
  func.func @transform_0(%arg0: i32) -> (i32, i32) {
    %c0_i32 = arith.constant 0 : i32
    %c0_i32_0 = arith.constant 0 : i32
    return %arg0, %c0_i32 : i32, i32
  }
  func.func @transform_1(%arg0: i32) -> (i32, i32) {
    %c0_i32 = arith.constant 0 : i32
    %c0_i32_0 = arith.constant 0 : i32
    %c0_i32_1 = arith.constant 0 : i32
    return %c0_i32, %c0_i32_0 : i32, i32
  }
  func.func @transform_2(%arg0: i32) -> (i32, i32) {
    %c0_i32 = arith.constant 0 : i32
    %c0_i32_0 = arith.constant 0 : i32
    %c0_i32_1 = arith.constant 0 : i32
    return %c0_i32, %c0_i32_0 : i32, i32
  }
  func.func @transform_3(%arg0: i32) -> (i32, i32) {
    %c0_i32 = arith.constant 0 : i32
    %c0_i32_0 = arith.constant 0 : i32
    return %arg0, %c0_i32 : i32, i32
  }
  func.func @transform_4(%arg0: i32) -> (i32, i32, i32) {
    %c0_i32 = arith.constant 0 : i32
    %c0_i32_0 = arith.constant 0 : i32
    %c0_i32_1 = arith.constant 0 : i32
    return %arg0, %c0_i32, %c0_i32_0 : i32, i32, i32
  }
}

module attributes {stable_mosaic.version = 11 : i64} {
  func.func @_matmul_bias_kernel(%arg0: i32, %arg1: memref<32x256xbf16, #tpu.memory_space<vmem>>, %arg2: memref<256x128xbf16, #tpu.memory_space<vmem>>, %arg3: memref<1x128xf32, #tpu.memory_space<vmem>>, %arg4: memref<32x128xf32, #tpu.memory_space<vmem>>) attributes {dimension_semantics = [#tpu.dimension_semantics<parallel>], iteration_bounds = array<i64: 1>, scalar_prefetch = 0 : i64, scratch_operands = 0 : i64, tpu.core_type = #tpu.core_type<tc>, window_params = [{transform_indices = @transform_0, window_bounds = array<i64: 32, 256>}, {pipeline_mode = #tpu.pipeline_mode<synchronous>, transform_indices = @transform_1, window_bounds = array<i64: 256, 128>}, {pipeline_mode = #tpu.pipeline_mode<synchronous>, transform_indices = @transform_2, window_bounds = array<i64: 1, 128>}, {transform_indices = @transform_3, window_bounds = array<i64: 32, 128>}]} {
    %c0 = arith.constant 0 : index
    %c0_0 = arith.constant 0 : index
    %0 = vector.load %arg1[%c0, %c0_0] : memref<32x256xbf16, #tpu.memory_space<vmem>>, vector<32x256xbf16>
    %c0_1 = arith.constant 0 : index
    %c0_2 = arith.constant 0 : index
    %1 = vector.load %arg2[%c0_1, %c0_2] : memref<256x128xbf16, #tpu.memory_space<vmem>>, vector<256x128xbf16>
    %cst = arith.constant dense<0.000000e+00> : vector<32x128xf32>
    %2 = tpu.matmul %0, %1, %cst {dimension_numbers = #tpu.dot_dimension_numbers<[1], [0], [0], [1], [0, 0, 1, 1], [], []>} : vector<32x256xbf16>, vector<256x128xbf16>, vector<32x128xf32> -> vector<32x128xf32>
    %c0_3 = arith.constant 0 : index
    %c0_4 = arith.constant 0 : index
    %3 = vector.load %arg3[%c0_3, %c0_4] : memref<1x128xf32, #tpu.memory_space<vmem>>, vector<1x128xf32>
    %4 = vector.broadcast %3 : vector<1x128xf32> to vector<32x128xf32>
    %5 = arith.addf %2, %4 : vector<32x128xf32>
    %c0_5 = arith.constant 0 : index
    %c0_6 = arith.constant 0 : index
    %6 = vector.load %arg4[%c0_5, %c0_6] : memref<32x128xf32, #tpu.memory_space<vmem>>, vector<32x128xf32>
    tpu.vector_store %arg4[%c0_5, %c0_6], %5 {strides = array<i32>} : memref<32x128xf32, #tpu.memory_space<vmem>>, vector<32x128xf32>,
    return
  }
  func.func @transform_0(%arg0: i32) -> (i32, i32) {
    %c0_i32 = arith.constant 0 : i32
    %c0_i32_0 = arith.constant 0 : i32
    return %arg0, %c0_i32 : i32, i32
  }
  func.func @transform_1(%arg0: i32) -> (i32, i32) {
    %c0_i32 = arith.constant 0 : i32
    %c0_i32_0 = arith.constant 0 : i32
    %c0_i32_1 = arith.constant 0 : i32
    return %c0_i32, %c0_i32_0 : i32, i32
  }
  func.func @transform_2(%arg0: i32) -> (i32, i32) {
    %c0_i32 = arith.constant 0 : i32
    %c0_i32_0 = arith.constant 0 : i32
    %c0_i32_1 = arith.constant 0 : i32
    return %c0_i32, %c0_i32_0 : i32, i32
  }
  func.func @transform_3(%arg0: i32) -> (i32, i32) {
    %c0_i32 = arith.constant 0 : i32
    %c0_i32_0 = arith.constant 0 : i32
    return %arg0, %c0_i32 : i32, i32
  }
}

module attributes {stable_mosaic.version = 11 : i64} {
  func.func @_matmul_bias_kernel(%arg0: i32, %arg1: memref<128x64xbf16, #tpu.memory_space<vmem>>, %arg2: memref<64x128xbf16, #tpu.memory_space<vmem>>, %arg3: memref<1x128xf32, #tpu.memory_space<vmem>>, %arg4: memref<128x128xf32, #tpu.memory_space<vmem>>) attributes {dimension_semantics = [#tpu.dimension_semantics<parallel>], iteration_bounds = array<i64: 1>, scalar_prefetch = 0 : i64, scratch_operands = 0 : i64, tpu.core_type = #tpu.core_type<tc>, window_params = [{transform_indices = @transform_0, window_bounds = array<i64: 128, 64>}, {pipeline_mode = #tpu.pipeline_mode<synchronous>, transform_indices = @transform_1, window_bounds = array<i64: 64, 128>}, {pipeline_mode = #tpu.pipeline_mode<synchronous>, transform_indices = @transform_2, window_bounds = array<i64: 1, 128>}, {transform_indices = @transform_3, window_bounds = array<i64: 128, 128>}]} {
    %c0 = arith.constant 0 : index
    %c0_0 = arith.constant 0 : index
    %0 = vector.load %arg1[%c0, %c0_0] : memref<128x64xbf16, #tpu.memory_space<vmem>>, vector<128x64xbf16>
    %c0_1 = arith.constant 0 : index
    %c0_2 = arith.constant 0 : index
    %1 = vector.load %arg2[%c0_1, %c0_2] : memref<64x128xbf16, #tpu.memory_space<vmem>>, vector<64x128xbf16>
    %cst = arith.constant dense<0.000000e+00> : vector<128x128xf32>
    %2 = tpu.matmul %0, %1, %cst {dimension_numbers = #tpu.dot_dimension_numbers<[1], [0], [0], [1], [0, 0, 1, 1], [], []>} : vector<128x64xbf16>, vector<64x128xbf16>, vector<128x128xf32> -> vector<128x128xf32>
    %c0_3 = arith.constant 0 : index
    %c0_4 = arith.constant 0 : index
    %3 = vector.load %arg3[%c0_3, %c0_4] : memref<1x128xf32, #tpu.memory_space<vmem>>, vector<1x128xf32>
    %4 = vector.broadcast %3 : vector<1x128xf32> to vector<128x128xf32>
    %5 = arith.addf %2, %4 : vector<128x128xf32>
    %cst_5 = arith.constant 0.000000e+00 : f32
    %6 = vector.broadcast %cst_5 : f32 to vector<128x128xf32>
    %7 = arith.maximumf %5, %6 : vector<128x128xf32>
    %c0_6 = arith.constant 0 : index
    %c0_7 = arith.constant 0 : index
    %8 = vector.load %arg4[%c0_6, %c0_7] : memref<128x128xf32, #tpu.memory_space<vmem>>, vector<128x128xf32>
    tpu.vector_store %arg4[%c0_6, %c0_7], %7 {strides = array<i32>} : memref<128x128xf32, #tpu.memory_space<vmem>>, vector<128x128xf32>,
    return
  }
  func.func @transform_0(%arg0: i32) -> (i32, i32) {
    %c0_i32 = arith.constant 0 : i32
    %c0_i32_0 = arith.constant 0 : i32
    return %arg0, %c0_i32 : i32, i32
  }
  func.func @transform_1(%arg0: i32) -> (i32, i32) {
    %c0_i32 = arith.constant 0 : i32
    %c0_i32_0 = arith.constant 0 : i32
    %c0_i32_1 = arith.constant 0 : i32
    return %c0_i32, %c0_i32_0 : i32, i32
  }
  func.func @transform_2(%arg0: i32) -> (i32, i32) {
    %c0_i32 = arith.constant 0 : i32
    %c0_i32_0 = arith.constant 0 : i32
    %c0_i32_1 = arith.constant 0 : i32
    return %c0_i32, %c0_i32_0 : i32, i32
  }
  func.func @transform_3(%arg0: i32) -> (i32, i32) {
    %c0_i32 = arith.constant 0 : i32
    %c0_i32_0 = arith.constant 0 : i32
    return %arg0, %c0_i32 : i32, i32
  }
}

module attributes {stable_mosaic.version = 11 : i64} {
  func.func @_matmul_bias_kernel(%arg0: i32, %arg1: memref<256x256xbf16, #tpu.memory_space<vmem>>, %arg2: memref<256x128xbf16, #tpu.memory_space<vmem>>, %arg3: memref<1x128xf32, #tpu.memory_space<vmem>>, %arg4: memref<256x128xf32, #tpu.memory_space<vmem>>) attributes {dimension_semantics = [#tpu.dimension_semantics<parallel>], iteration_bounds = array<i64: 2>, scalar_prefetch = 0 : i64, scratch_operands = 0 : i64, tpu.core_type = #tpu.core_type<tc>, window_params = [{transform_indices = @transform_0, window_bounds = array<i64: 256, 256>}, {pipeline_mode = #tpu.pipeline_mode<synchronous>, transform_indices = @transform_1, window_bounds = array<i64: 256, 128>}, {pipeline_mode = #tpu.pipeline_mode<synchronous>, transform_indices = @transform_2, window_bounds = array<i64: 1, 128>}, {transform_indices = @transform_3, window_bounds = array<i64: 256, 128>}]} {
    %c0 = arith.constant 0 : index
    %c0_0 = arith.constant 0 : index
    %0 = vector.load %arg1[%c0, %c0_0] : memref<256x256xbf16, #tpu.memory_space<vmem>>, vector<256x256xbf16>
    %c0_1 = arith.constant 0 : index
    %c0_2 = arith.constant 0 : index
    %1 = vector.load %arg2[%c0_1, %c0_2] : memref<256x128xbf16, #tpu.memory_space<vmem>>, vector<256x128xbf16>
    %cst = arith.constant dense<0.000000e+00> : vector<256x128xf32>
    %2 = tpu.matmul %0, %1, %cst {dimension_numbers = #tpu.dot_dimension_numbers<[1], [0], [0], [1], [0, 0, 1, 1], [], []>} : vector<256x256xbf16>, vector<256x128xbf16>, vector<256x128xf32> -> vector<256x128xf32>
    %c0_3 = arith.constant 0 : index
    %c0_4 = arith.constant 0 : index
    %3 = vector.load %arg3[%c0_3, %c0_4] : memref<1x128xf32, #tpu.memory_space<vmem>>, vector<1x128xf32>
    %4 = vector.broadcast %3 : vector<1x128xf32> to vector<256x128xf32>
    %5 = arith.addf %2, %4 : vector<256x128xf32>
    %c0_5 = arith.constant 0 : index
    %c0_6 = arith.constant 0 : index
    %6 = vector.load %arg4[%c0_5, %c0_6] : memref<256x128xf32, #tpu.memory_space<vmem>>, vector<256x128xf32>
    tpu.vector_store %arg4[%c0_5, %c0_6], %5 {strides = array<i32>} : memref<256x128xf32, #tpu.memory_space<vmem>>, vector<256x128xf32>,
    return
  }
  func.func @transform_0(%arg0: i32) -> (i32, i32) {
    %c0_i32 = arith.constant 0 : i32
    %c0_i32_0 = arith.constant 0 : i32
    return %arg0, %c0_i32 : i32, i32
  }
  func.func @transform_1(%arg0: i32) -> (i32, i32) {
    %c0_i32 = arith.constant 0 : i32
    %c0_i32_0 = arith.constant 0 : i32
    %c0_i32_1 = arith.constant 0 : i32
    return %c0_i32, %c0_i32_0 : i32, i32
  }
  func.func @transform_2(%arg0: i32) -> (i32, i32) {
    %c0_i32 = arith.constant 0 : i32
    %c0_i32_0 = arith.constant 0 : i32
    %c0_i32_1 = arith.constant 0 : i32
    return %c0_i32, %c0_i32_0 : i32, i32
  }
  func.func @transform_3(%arg0: i32) -> (i32, i32) {
    %c0_i32 = arith.constant 0 : i32
    %c0_i32_0 = arith.constant 0 : i32
    return %arg0, %c0_i32 : i32, i32
  }
}

</mosaic_0001>

<bundles_post_ra>
// kernel: vqvae_forward.5
= control target key start
LH: loop header
LB: loop body
LE: loop exit
PB: predicated region body
PF: predicated region fallthrough
CT: control target
= control target key end

     0   :  { %vm102_vm0 = vcmask 392192   ;;  %s442_s1 = inlined_call_operand.vmem [shape: bf16[48,128], index: 1, kind: input, shape index: {}]   ;;  %s443_s0 = inlined_call_operand.vmem [shape: bf16[128,48], index: 0, kind: input, shape index: {}]   ;;  %s444_s2 = inlined_call_operand.vmem [shape: f32[1,128], index: 2, kind: input, shape index: {}]   ;;  %s445_s3 = inlined_call_operand.vmem [shape: f32[128,128], index: 3, kind: output, shape index: {}]  }
   0x1   :  { %v319_v0 = vld [vmem:[%s442_s1] sm:$0xff]   ;;  %v320_v1 = vld [vmem:[%s442_s1 + $0x8] sm:$0xff]   ;;  %v321_v2 = vld [vmem:[%s442_s1 + $0x10] sm:$0xff]  }
   0x2   :  { %291 = vmatprep.subr.bf16.mxu0 %v319_v0  ;;  %313 = vmatprep.subr.bf16.mxu1 %v319_v0  ;;  %v322_v3 = vld [vmem:[%s443_s0] sm:$0xff]   ;;  %v324_v5 = vld [vmem:[%s443_s0 + $0x8] sm:$0xff]   ;;  %v326_v7 = vld [vmem:[%s443_s0 + $0x10] sm:$0xff]  }
   0x3   :  { %292 = vmatpush3.bf16.msra.mxu0 %v319_v0  ;;  %316 = vmatpush3.bf16.msra.mxu1 %v319_v0  ;;  %v323_v4 = vld [vmem:[%s443_s0 + $0x20] sm:$0xff]   ;;  %v325_v6 = vld [vmem:[%s443_s0 + $0x28] sm:$0xff]   ;;  %v327_v8 = vld [vmem:[%s443_s0 + $0x30] sm:$0xff]  }
   0x4   :  { %293 = vmatprep.subr.bf16.mxu0 %v320_v1  ;;  %314 = vmatprep.subr.bf16.mxu1 %v320_v1  ;;  %v328_v9 = vld [vmem:[%s443_s0 + $0x18] sm:$0xff]   ;;  %v260_v11 = vld [vmem:[%s444_s2] ss:$0 sm:$0xff] }
   0x5   :  { %297 = vmatprep.mubr.msk.bf16.mxu0 %vm102_vm0, %v322_v3  ;;  %305 = vmatprep.mubr.msk.bf16.mxu1 %vm102_vm0, %v323_v4  ;;  %v329_v10 = vld [vmem:[%s443_s0 + $0x38] sm:$0xff]  }
   0x7   :  { %294 = vmatpush3.bf16.msra.mxu0 %v320_v1  ;;  %317 = vmatpush3.bf16.msra.mxu1 %v320_v1 }
   0x8   :  { %295 = vmatprep.subr.bf16.mxu0 %v321_v2  ;;  %315 = vmatprep.subr.bf16.mxu1 %v321_v2 }
   0xb   :  { %296 = vmatpush3.bf16.msra.mxu0 %v321_v2  ;;  %318 = vmatpush3.bf16.msra.mxu1 %v321_v2 }
   0xe   :  { %298 = vmatmul.mubr.msk.bf16.vlgmr.msra.gmra.mrb[0].mxu0 %vm102_vm0, %v324_v5  ;;  %306 = vmatmul.mubr.msk.bf16.vlgmr.msra.gmra.mrb[0].mxu1 %vm102_vm0, %v325_v6 }
   0xf   :  { %301 = vmatprep.mubr.msk.bf16.mxu0 %vm102_vm0, %v326_v7  ;;  %309 = vmatprep.mubr.msk.bf16.mxu1 %vm102_vm0, %v327_v8 }
  0x16   :  { %302 = vmatmul.mubr.msk.bf16.gmra.mrb[4].mxu0 %vm102_vm0, %v328_v9  ;;  %310 = vmatmul.mubr.msk.bf16.gmra.mrb[4].mxu1 %vm102_vm0, %v329_v10 }
  0xe1   :  { %v299_v12 = vpop.f32.mrb[0].mxu0  ;;  %v307_v13 = vpop.f32.mrb[0].mxu1 }
  0xe2   :  { %v170_v14 = vadd.f32 %v299_v12, %v260_v11  ;;  %v202_v15 = vadd.f32 %v307_v13, %v260_v11  ;;  %v161_v16 = vpop.f32.mrb[1].mxu0  ;;  %v193_v17 = vpop.f32.mrb[1].mxu1 }
  0xe3   :  { %v162_v18 = vadd.f32 %v260_v11, %v161_v16  ;;  %v194_v19 = vadd.f32 %v260_v11, %v193_v17  ;;  %v300_v20 = vpop.f32.mrb[2].mxu0  ;;  %v308_v21 = vpop.f32.mrb[2].mxu1 }
  0xe4   :  { %v226_v22 = vmax.f32 %v170_v14, 0.0  ;;  %v234_v23 = vmax.f32 %v202_v15, 0.0  ;;  %v173_v24 = vadd.f32 %v300_v20, %v260_v11  ;;  %v205_v25 = vadd.f32 %v308_v21, %v260_v11  ;;  %v164_v26 = vpop.f32.mrb[3].mxu0  ;;  %v196_v27 = vpop.f32.mrb[3].mxu1 }
  0xe5   :  { %v224_v28 = vmax.f32 %v162_v18, 0.0  ;;  %v232_v29 = vmax.f32 %v194_v19, 0.0  ;;  %v165_v30 = vadd.f32 %v260_v11, %v164_v26  ;;  %v197_v31 = vadd.f32 %v260_v11, %v196_v27 }
  0xe6   :  { %242 = vst [vmem:[%s445_s3 + $0x10] sm:$0xff] %v226_v22  ;;  %250 = vst [vmem:[%s445_s3 + $0x50] sm:$0xff] %v234_v23  ;;  %v227_v32 = vmax.f32 %v173_v24, 0.0  ;;  %v235_v33 = vmax.f32 %v205_v25, 0.0 }
  0xe7   :  { %240 = vst [vmem:[%s445_s3] sm:$0xff] %v224_v28  ;;  %248 = vst [vmem:[%s445_s3 + $0x40] sm:$0xff] %v232_v29  ;;  %v225_v34 = vmax.f32 %v165_v30, 0.0  ;;  %v233_v35 = vmax.f32 %v197_v31, 0.0 }
  0xe8   :  { %243 = vst [vmem:[%s445_s3 + $0x18] sm:$0xff] %v227_v32  ;;  %251 = vst [vmem:[%s445_s3 + $0x58] sm:$0xff] %v235_v33 }
  0xe9   :  { %241 = vst [vmem:[%s445_s3 + $0x8] sm:$0xff] %v225_v34  ;;  %249 = vst [vmem:[%s445_s3 + $0x48] sm:$0xff] %v233_v35  ;;  %v303_v36 = vpop.f32.mrb[4].mxu0  ;;  %v311_v37 = vpop.f32.mrb[4].mxu1 }
  0xea   :  { %v186_v38 = vadd.f32 %v303_v36, %v260_v11  ;;  %v218_v39 = vadd.f32 %v311_v37, %v260_v11  ;;  %v177_v40 = vpop.f32.mrb[5].mxu0  ;;  %v209_v41 = vpop.f32.mrb[5].mxu1 }
  0xeb   :  { %v178_v42 = vadd.f32 %v260_v11, %v177_v40  ;;  %v210_v43 = vadd.f32 %v260_v11, %v209_v41  ;;  %v304_v44 = vpop.f32.mrb[6].mxu0  ;;  %v312_v45 = vpop.f32.mrb[6].mxu1 }
  0xec   :  { %v230_v46 = vmax.f32 %v186_v38, 0.0  ;;  %v238_v47 = vmax.f32 %v218_v39, 0.0  ;;  %v189_v48 = vadd.f32 %v304_v44, %v260_v11  ;;  %v221_v49 = vadd.f32 %v312_v45, %v260_v11  ;;  %v180_v50 = vpop.f32.mrb[7].mxu0  ;;  %v212_v51 = vpop.f32.mrb[7].mxu1 }
  0xed   :  { %v228_v52 = vmax.f32 %v178_v42, 0.0  ;;  %v236_v53 = vmax.f32 %v210_v43, 0.0  ;;  %v181_v54 = vadd.f32 %v260_v11, %v180_v50  ;;  %v213_v55 = vadd.f32 %v260_v11, %v212_v51 }
  0xee   :  { %246 = vst [vmem:[%s445_s3 + $0x30] sm:$0xff] %v230_v46  ;;  %254 = vst [vmem:[%s445_s3 + $0x70] sm:$0xff] %v238_v47  ;;  %v231_v56 = vmax.f32 %v189_v48, 0.0  ;;  %v239_v57 = vmax.f32 %v221_v49, 0.0 }
  0xef   :  { %244 = vst [vmem:[%s445_s3 + $0x20] sm:$0xff] %v228_v52  ;;  %252 = vst [vmem:[%s445_s3 + $0x60] sm:$0xff] %v236_v53  ;;  %v229_v58 = vmax.f32 %v181_v54, 0.0  ;;  %v237_v59 = vmax.f32 %v213_v55, 0.0 }
  0xf0   :  { %247 = vst [vmem:[%s445_s3 + $0x38] sm:$0xff] %v231_v56  ;;  %255 = vst [vmem:[%s445_s3 + $0x78] sm:$0xff] %v239_v57 }
  0xf1   :  { %245 = vst [vmem:[%s445_s3 + $0x28] sm:$0xff] %v229_v58  ;;  %253 = vst [vmem:[%s445_s3 + $0x68] sm:$0xff] %v237_v59 }

// kernel: vqvae_forward.6
= control target key start
LH: loop header
LB: loop body
LE: loop exit
PB: predicated region body
PF: predicated region fallthrough
CT: control target
= control target key end

     0   :  { %s413_s1 = inlined_call_operand.vmem [shape: bf16[256,128], index: 1, kind: input, shape index: {}]   ;;  %s414_s0 = inlined_call_operand.vmem [shape: bf16[32,256], index: 0, kind: input, shape index: {}]   ;;  %s415_s2 = inlined_call_operand.vmem [shape: f32[1,128], index: 2, kind: input, shape index: {}]   ;;  %s416_s3 = inlined_call_operand.vmem [shape: f32[32,128], index: 3, kind: output, shape index: {}]  }
   0x1   :  { %v296_v0 = vld [vmem:[%s413_s1 + $0x40] sm:$0xff]   ;;  %v298_v2 = vld [vmem:[%s413_s1 + $0x48] sm:$0xff]   ;;  %v300_v4 = vld [vmem:[%s413_s1 + $0x50] sm:$0xff]  }
   0x2   :  { %v297_v1 = vld [vmem:[%s413_s1] sm:$0xff]   ;;  %252 = vmatprep.subr.bf16.mxu0 %v296_v0  ;;  %280 = vmatprep.subr.bf16.mxu1 %v296_v0  ;;  %v299_v3 = vld [vmem:[%s413_s1 + $0x8] sm:$0xff]   ;;  %v301_v5 = vld [vmem:[%s413_s1 + $0x10] sm:$0xff]  }
   0x3   :  { %253 = vmatpush3.bf16.msra.mxu0 %v297_v1  ;;  %288 = vmatpush3.bf16.msra.mxu1 %v297_v1  ;;  %v302_v6 = vld [vmem:[%s413_s1 + $0x58] sm:$0xff]   ;;  %v304_v8 = vld [vmem:[%s413_s1 + $0x60] sm:$0xff]   ;;  %v306_v10 = vld [vmem:[%s413_s1 + $0x68] sm:$0xff]  }
   0x4   :  { %254 = vmatprep.subr.bf16.mxu0 %v298_v2  ;;  %281 = vmatprep.subr.bf16.mxu1 %v298_v2  ;;  %v303_v7 = vld [vmem:[%s413_s1 + $0x18] sm:$0xff]   ;;  %v305_v9 = vld [vmem:[%s413_s1 + $0x20] sm:$0xff]   ;;  %v307_v13 = vld [vmem:[%s413_s1 + $0x28] sm:$0xff]  }
   0x5   :  { %v314_v11 = vld [vmem:[%s414_s0 + $0x4] ss:$8 sps:$4 sm:$0xff]   ;;  %v317_v12 = vld [vmem:[%s414_s0 + $0x14] ss:$8 sps:$4 sm:$0xff]   ;;  %v312_v18 = vld [vmem:[%s414_s0] ss:$8 sps:$4 sm:$0xff]  }
   0x6   :  { %v308_v14 = vld [vmem:[%s413_s1 + $0x70] sm:$0xff]   ;;  %206 = vmatprep.mubr.bf16.mxu0 %v314_v11  ;;  %214 = vmatprep.mubr.bf16.mxu1 %v317_v12  ;;  %v310_v16 = vld [vmem:[%s413_s1 + $0x78] sm:$0xff]   ;;  %v231_v22 = vld [vmem:[%s415_s2] ss:$0 sm:$0xff] }
   0x7   :  { %255 = vmatpush3.bf16.msra.mxu0 %v299_v3  ;;  %289 = vmatpush3.bf16.msra.mxu1 %v299_v3  ;;  %v309_v15 = vld [vmem:[%s413_s1 + $0x30] sm:$0xff]   ;;  %v311_v17 = vld [vmem:[%s413_s1 + $0x38] sm:$0xff]  }
   0x8   :  { %256 = vmatprep.subr.bf16.mxu0 %v300_v4  ;;  %282 = vmatprep.subr.bf16.mxu1 %v300_v4  ;;  %v315_v19 = vld [vmem:[%s414_s0 + $0x10] ss:$8 sps:$4 sm:$0xff]  }
   0xb   :  { %257 = vmatpush3.bf16.msra.mxu0 %v301_v5  ;;  %290 = vmatpush3.bf16.msra.mxu1 %v301_v5 }
   0xc   :  { %258 = vmatprep.subr.bf16.mxu0 %v302_v6  ;;  %283 = vmatprep.subr.bf16.mxu1 %v302_v6 }
   0xf   :  { %259 = vmatpush3.bf16.msra.mxu0 %v303_v7  ;;  %291 = vmatpush3.bf16.msra.mxu1 %v303_v7 }
  0x10   :  { %260 = vmatprep.subr.bf16.mxu0 %v304_v8  ;;  %284 = vmatprep.subr.bf16.mxu1 %v304_v8 }
  0x13   :  { %261 = vmatpush3.bf16.msra.mxu0 %v305_v9  ;;  %292 = vmatpush3.bf16.msra.mxu1 %v305_v9 }
  0x14   :  { %262 = vmatprep.subr.bf16.mxu0 %v306_v10  ;;  %285 = vmatprep.subr.bf16.mxu1 %v306_v10 }
  0x17   :  { %263 = vmatpush3.bf16.msra.mxu0 %v307_v13  ;;  %293 = vmatpush3.bf16.msra.mxu1 %v307_v13 }
  0x18   :  { %264 = vmatprep.subr.bf16.mxu0 %v308_v14  ;;  %286 = vmatprep.subr.bf16.mxu1 %v308_v14 }
  0x1b   :  { %265 = vmatpush3.bf16.msra.mxu0 %v309_v15  ;;  %294 = vmatpush3.bf16.msra.mxu1 %v309_v15 }
  0x1c   :  { %266 = vmatprep.subr.bf16.mxu0 %v310_v16  ;;  %287 = vmatprep.subr.bf16.mxu1 %v310_v16 }
  0x1f   :  { %267 = vmatpush3.bf16.msra.mxu0 %v311_v17  ;;  %295 = vmatpush3.bf16.msra.mxu1 %v311_v17 }
  0x22   :  { %207 = vmatmul.mubr.bf16.vlgmr.msra.gmra.mrb[0].mxu0 %v312_v18  ;;  %215 = vmatmul.mubr.bf16.vlgmr.msra.gmra.mrb[0].mxu1 %v315_v19 }
  0xf5   :  { %v268_v20 = vpop.f32.mrb[0].mxu0  ;;  %v274_v21 = vpop.f32.mrb[0].mxu1 }
  0xf6   :  { %v269_v23 = vpop.f32.mrb[1].mxu0  ;;  %v275_v24 = vpop.f32.mrb[1].mxu1 }
  0xf7   :  { %v270_v25 = vadd.f32 %v269_v23, %v268_v20  ;;  %v276_v26 = vadd.f32 %v275_v24, %v274_v21  ;;  %v271_v27 = vpop.f32.mrb[2].mxu0  ;;  %v277_v28 = vpop.f32.mrb[2].mxu1 }
  0xf8   :  { %v272_v29 = vpop.f32.mrb[3].mxu0  ;;  %v278_v30 = vpop.f32.mrb[3].mxu1 }
  0xf9   :  { %v209_v31 = vadd.f32 %v270_v25, %v231_v22  ;;  %v217_v32 = vadd.f32 %v276_v26, %v231_v22  ;;  %v273_v33 = vadd.f32 %v272_v29, %v271_v27  ;;  %v279_v34 = vadd.f32 %v278_v30, %v277_v28 }
  0xfb   :  { %223 = vst [vmem:[%s416_s3] sm:$0xff] %v209_v31  ;;  %225 = vst [vmem:[%s416_s3 + $0x10] sm:$0xff] %v217_v32  ;;  %v212_v35 = vadd.f32 %v273_v33, %v231_v22  ;;  %v220_v36 = vadd.f32 %v279_v34, %v231_v22 }
  0xfd   :  { %224 = vst [vmem:[%s416_s3 + $0x8] sm:$0xff] %v212_v35  ;;  %226 = vst [vmem:[%s416_s3 + $0x18] sm:$0xff] %v220_v36 }

// kernel: vqvae_forward.7
= control target key start
LH: loop header
LB: loop body
LE: loop exit
PB: predicated region body
PF: predicated region fallthrough
CT: control target
= control target key end

     0   :  { %vm149_vm0 = vcmask 31744   ;;  %s3873_s1 = inlined_call_operand.vmem [shape: f32[1024,4], index: 1, kind: input, shape index: {}]   ;;  %s3874_s0 = inlined_call_operand.vmem [shape: f32[32,4], index: 0, kind: input, shape index: {}]   ;;  %s3875_s2 = inlined_call_operand.vmem [shape: f32[1,1024], index: 2, kind: input, shape index: {}]   ;;  %s3876_s3 = inlined_call_operand.vmem [shape: f32[32,4], index: 3, kind: output, shape index: {0}]   ;;  %s3877_s4 = inlined_call_operand.vmem [shape: f32[1,8,128], index: 4, kind: output, shape index: {1}]  }
   0x1   :  { %v36_v0 = vld [vmem:[%s3873_s1 + $0x80] sm:$0xff]  ;;  %v37_v1 = vld [vmem:[%s3873_s1 + $0x88] sm:$0xff]  ;;  %vm2634_vm1 = vmpackc.low %vm149_vm0, %vm149_vm0 }
   0x2   :  { %v2638_v3 = vpack.c.bf16 %v37_v1, %v36_v0  ;;  %v20_v4 = vld [vmem:[%s3873_s1] sm:$0xff]  ;;  %v21_v5 = vld [vmem:[%s3873_s1 + $0x8] sm:$0xff]  ;;  %v38_v13 = vld [vmem:[%s3873_s1 + $0x90] sm:$0xff] }
   0x3   :  { %v68_v6 = vld [vmem:[%s3873_s1 + $0x180] sm:$0xff]  ;;  %v2649_v7 = vpack.c.bf16 %v21_v5, %v20_v4  ;;  %v69_v8 = vld [vmem:[%s3873_s1 + $0x188] sm:$0xff]  ;;  %v39_v14 = vld [vmem:[%s3873_s1 + $0x98] sm:$0xff] }
   0x4   :  { %v52_v9 = vld [vmem:[%s3873_s1 + $0x100] sm:$0xff]  ;;  %v53_v10 = vld [vmem:[%s3873_s1 + $0x108] sm:$0xff]  ;;  %2275 = vmatprep.subr.msk.bf16.mxu0 %vm2634_vm1, %v2638_v3  ;;  %v2663_v11 = vpack.c.bf16 %v69_v8, %v68_v6  ;;  %v2676_v15 = vpack.c.bf16 %v39_v14, %v38_v13  ;;  %v70_v16 = vld [vmem:[%s3873_s1 + $0x190] sm:$0xff] }
   0x5   :  { %v2665_v12 = vpack.c.bf16 %v53_v10, %v52_v9  ;;  %2278 = vmatpush3.bf16.xpose.msk.msra.mxu0 %vm2634_vm1, %v2649_v7  ;;  %v71_v17 = vld [vmem:[%s3873_s1 + $0x198] sm:$0xff]  ;;  %v22_v18 = vld [vmem:[%s3873_s1 + $0x10] sm:$0xff]  ;;  %v40_v21 = vld [vmem:[%s3873_s1 + $0xa0] sm:$0xff] }
   0x6   :  { %2323 = vmatprep.subr.msk.bf16.mxu1 %vm2634_vm1, %v2663_v11  ;;  %v23_v19 = vld [vmem:[%s3873_s1 + $0x18] sm:$0xff]  ;;  %v2693_v20 = vpack.c.bf16 %v71_v17, %v70_v16  ;;  %2281 = vmatprep.subr.msk.bf16.mxu0 %vm2634_vm1, %v2676_v15  ;;  %v41_v22 = vld [vmem:[%s3873_s1 + $0xa8] sm:$0xff]  ;;  %v54_v23 = vld [vmem:[%s3873_s1 + $0x110] sm:$0xff] }
   0x7   :  { %2326 = vmatpush3.bf16.xpose.msk.msra.mxu1 %vm2634_vm1, %v2665_v12  ;;  %v55_v24 = vld [vmem:[%s3873_s1 + $0x118] sm:$0xff]  ;;  %v2716_v25 = vpack.c.bf16 %v23_v19, %v22_v18  ;;  %v72_v26 = vld [vmem:[%s3873_s1 + $0x1a0] sm:$0xff]  ;;  %v73_v27 = vld [vmem:[%s3873_s1 + $0x1a8] sm:$0xff]  ;;  %v2724_v28 = vpack.c.bf16 %v41_v22, %v40_v21 }
   0x8   :  { %2329 = vmatprep.subr.msk.bf16.mxu1 %vm2634_vm1, %v2693_v20  ;;  %v2726_v29 = vpack.c.bf16 %v55_v24, %v54_v23  ;;  %v2728_v30 = vpack.c.bf16 %v73_v27, %v72_v26  ;;  %v24_v31 = vld [vmem:[%s3873_s1 + $0x20] sm:$0xff]  ;;  %v25_v32 = vld [vmem:[%s3873_s1 + $0x28] sm:$0xff]  ;;  %v42_v33 = vld [vmem:[%s3873_s1 + $0xb0] sm:$0xff] }
   0x9   :  { %v43_v34 = vld [vmem:[%s3873_s1 + $0xb8] sm:$0xff]  ;;  %v56_v35 = vld [vmem:[%s3873_s1 + $0x120] sm:$0xff]  ;;  %v57_v36 = vld [vmem:[%s3873_s1 + $0x128] sm:$0xff]  ;;  %v2760_v37 = vpack.c.bf16 %v25_v32, %v24_v31 }
   0xa   :  { %v74_v38 = vld [vmem:[%s3873_s1 + $0x1b0] sm:$0xff]  ;;  %v75_v39 = vld [vmem:[%s3873_s1 + $0x1b8] sm:$0xff]  ;;  %v2768_v40 = vpack.c.bf16 %v43_v34, %v42_v33  ;;  %v2770_v41 = vpack.c.bf16 %v57_v36, %v56_v35  ;;  %v2789_v45 = vld [vmem:[%s3874_s0] sm:$0xff] }
   0xb   :  { %v2772_v42 = vpack.c.bf16 %v75_v39, %v74_v38  ;;  %v26_v43 = vld [vmem:[%s3873_s1 + $0x30] sm:$0xff]  ;;  %v27_v44 = vld [vmem:[%s3873_s1 + $0x38] sm:$0xff]  ;;  %v44_v46 = vld [vmem:[%s3873_s1 + $0xc0] sm:$0xff]  ;;  %1969 = vmatprep.mubr.msk.f32.mxu0 %vm149_vm0, %v2789_v45  ;;  %2009 = vmatprep.mubr.msk.f32.mxu1 %vm149_vm0, %v2789_v45 }
   0xc   :  { %v45_v47 = vld [vmem:[%s3873_s1 + $0xc8] sm:$0xff]  ;;  %v58_v48 = vld [vmem:[%s3873_s1 + $0x130] sm:$0xff]  ;;  %v59_v49 = vld [vmem:[%s3873_s1 + $0x138] sm:$0xff]  ;;  %v2813_v50 = vpack.c.bf16 %v27_v44, %v26_v43 }
   0xd   :  { %2284 = vmatpush3.bf16.xpose.msk.msra.mxu0 %vm2634_vm1, %v2716_v25  ;;  %v76_v51 = vld [vmem:[%s3873_s1 + $0x1c0] sm:$0xff]  ;;  %v77_v52 = vld [vmem:[%s3873_s1 + $0x1c8] sm:$0xff]  ;;  %v2821_v53 = vpack.c.bf16 %v45_v47, %v44_v46  ;;  %v2823_v54 = vpack.c.bf16 %v59_v49, %v58_v48  ;;  %v46_v58 = vld [vmem:[%s3873_s1 + $0xd0] sm:$0xff] }
   0xe   :  { %2287 = vmatprep.subr.msk.bf16.mxu0 %vm2634_vm1, %v2724_v28  ;;  %v2825_v55 = vpack.c.bf16 %v77_v52, %v76_v51  ;;  %v28_v56 = vld [vmem:[%s3873_s1 + $0x40] sm:$0xff]  ;;  %v29_v57 = vld [vmem:[%s3873_s1 + $0x48] sm:$0xff]  ;;  %v47_v59 = vld [vmem:[%s3873_s1 + $0xd8] sm:$0xff] }
   0xf   :  { %2332 = vmatpush3.bf16.xpose.msk.msra.mxu1 %vm2634_vm1, %v2726_v29  ;;  %v60_v60 = vld [vmem:[%s3873_s1 + $0x140] sm:$0xff]  ;;  %v61_v61 = vld [vmem:[%s3873_s1 + $0x148] sm:$0xff]  ;;  %v2857_v62 = vpack.c.bf16 %v29_v57, %v28_v56  ;;  %v78_v63 = vld [vmem:[%s3873_s1 + $0x1d0] sm:$0xff]  ;;  %v2865_v1 = vpack.c.bf16 %v47_v59, %v46_v58 }
  0x10   :  { %2335 = vmatprep.subr.msk.bf16.mxu1 %vm2634_vm1, %v2728_v30  ;;  %v79_v0 = vld [vmem:[%s3873_s1 + $0x1d8] sm:$0xff]  ;;  %v2867_v4 = vpack.c.bf16 %v61_v61, %v60_v60  ;;  %v30_v6 = vld [vmem:[%s3873_s1 + $0x50] sm:$0xff]  ;;  %v48_v9 = vld [vmem:[%s3873_s1 + $0xe0] sm:$0xff] }
  0x11   :  { %v2869_v5 = vpack.c.bf16 %v79_v0, %v78_v63  ;;  %v31_v8 = vld [vmem:[%s3873_s1 + $0x58] sm:$0xff]  ;;  %v49_v10 = vld [vmem:[%s3873_s1 + $0xe8] sm:$0xff]  ;;  %v62_v13 = vld [vmem:[%s3873_s1 + $0x150] sm:$0xff] }
  0x12   :  { %v63_v14 = vld [vmem:[%s3873_s1 + $0x158] sm:$0xff]  ;;  %v2901_v16 = vpack.c.bf16 %v31_v8, %v30_v6  ;;  %v80_v17 = vld [vmem:[%s3873_s1 + $0x1e0] sm:$0xff]  ;;  %v81_v18 = vld [vmem:[%s3873_s1 + $0x1e8] sm:$0xff]  ;;  %v2909_v19 = vpack.c.bf16 %v49_v10, %v48_v9 }
  0x13   :  { %v2911_v21 = vpack.c.bf16 %v63_v14, %v62_v13  ;;  %v2913_v22 = vpack.c.bf16 %v81_v18, %v80_v17  ;;  %v32_v23 = vld [vmem:[%s3873_s1 + $0x60] sm:$0xff]  ;;  %v33_v24 = vld [vmem:[%s3873_s1 + $0x68] sm:$0xff]  ;;  %v50_v26 = vld [vmem:[%s3873_s1 + $0xf0] sm:$0xff] }
  0x14   :  { %v51_v27 = vld [vmem:[%s3873_s1 + $0xf8] sm:$0xff]  ;;  %v64_v31 = vld [vmem:[%s3873_s1 + $0x160] sm:$0xff]  ;;  %v65_v32 = vld [vmem:[%s3873_s1 + $0x168] sm:$0xff]  ;;  %v2945_v33 = vpack.c.bf16 %v33_v24, %v32_v23 }
  0x15   :  { %2290 = vmatpush3.bf16.xpose.msk.msra.mxu0 %vm2634_vm1, %v2760_v37  ;;  %v82_v34 = vld [vmem:[%s3873_s1 + $0x1f0] sm:$0xff]  ;;  %v83_v35 = vld [vmem:[%s3873_s1 + $0x1f8] sm:$0xff]  ;;  %v2953_v36 = vpack.c.bf16 %v51_v27, %v50_v26  ;;  %v2955_v38 = vpack.c.bf16 %v65_v32, %v64_v31  ;;  %v100_v46 = vld [vmem:[%s3873_s1 + $0x280] sm:$0xff] }
  0x16   :  { %2293 = vmatprep.subr.msk.bf16.mxu0 %vm2634_vm1, %v2768_v40  ;;  %v2957_v39 = vpack.c.bf16 %v83_v35, %v82_v34  ;;  %v34_v43 = vld [vmem:[%s3873_s1 + $0x70] sm:$0xff]  ;;  %v35_v44 = vld [vmem:[%s3873_s1 + $0x78] sm:$0xff]  ;;  %v101_v47 = vld [vmem:[%s3873_s1 + $0x288] sm:$0xff] }
  0x17   :  { %2338 = vmatpush3.bf16.xpose.msk.msra.mxu1 %vm2634_vm1, %v2770_v41  ;;  %v66_v48 = vld [vmem:[%s3873_s1 + $0x170] sm:$0xff]  ;;  %v67_v49 = vld [vmem:[%s3873_s1 + $0x178] sm:$0xff]  ;;  %v2989_v51 = vpack.c.bf16 %v35_v44, %v34_v43  ;;  %v132_v52 = vld [vmem:[%s3873_s1 + $0x380] sm:$0xff]  ;;  %v2997_v57 = vpack.c.bf16 %v101_v47, %v100_v46 }
  0x18   :  { %2341 = vmatprep.subr.msk.bf16.mxu1 %vm2634_vm1, %v2772_v42  ;;  %v133_v56 = vld [vmem:[%s3873_s1 + $0x388] sm:$0xff]  ;;  %v2999_v58 = vpack.c.bf16 %v67_v49, %v66_v48  ;;  %v84_v60 = vld [vmem:[%s3873_s1 + $0x200] sm:$0xff]  ;;  %v102_v63 = vld [vmem:[%s3873_s1 + $0x290] sm:$0xff] }
  0x19   :  { %v3001_v59 = vpack.c.bf16 %v133_v56, %v132_v52  ;;  %v85_v61 = vld [vmem:[%s3873_s1 + $0x208] sm:$0xff]  ;;  %v103_v0 = vld [vmem:[%s3873_s1 + $0x298] sm:$0xff]  ;;  %v116_v6 = vld [vmem:[%s3873_s1 + $0x300] sm:$0xff] }
  0x1a   :  { %v117_v8 = vld [vmem:[%s3873_s1 + $0x308] sm:$0xff]  ;;  %v3033_v9 = vpack.c.bf16 %v85_v61, %v84_v60  ;;  %v134_v10 = vld [vmem:[%s3873_s1 + $0x390] sm:$0xff]  ;;  %v135_v13 = vld [vmem:[%s3873_s1 + $0x398] sm:$0xff]  ;;  %v3041_v14 = vpack.c.bf16 %v103_v0, %v102_v63 }
  0x1b   :  { %v3046_v17 = vld [vmem:[%s3874_s0 + $0x8] sm:$0xff]  ;;  %v3048_v18 = vpack.c.bf16 %v117_v8, %v116_v6  ;;  %v3052_v23 = vpack.c.bf16 %v135_v13, %v134_v10  ;;  %v86_v24 = vld [vmem:[%s3873_s1 + $0x210] sm:$0xff]  ;;  %v87_v26 = vld [vmem:[%s3873_s1 + $0x218] sm:$0xff] }
  0x1c   :  { %v3073_v27 = vld [vmem:[%s3874_s0 + $0x10] sm:$0xff]  ;;  %v104_v31 = vld [vmem:[%s3873_s1 + $0x2a0] sm:$0xff]  ;;  %v105_v32 = vld [vmem:[%s3873_s1 + $0x2a8] sm:$0xff]  ;;  %v3097_v43 = vpack.c.bf16 %v87_v26, %v86_v24 }
  0x1d   :  { %2296 = vmatpush3.bf16.xpose.msk.msra.mxu0 %vm2634_vm1, %v2813_v50  ;;  %v118_v34 = vld [vmem:[%s3873_s1 + $0x310] sm:$0xff]  ;;  %v119_v35 = vld [vmem:[%s3873_s1 + $0x318] sm:$0xff]  ;;  %v136_v44 = vld [vmem:[%s3873_s1 + $0x3a0] sm:$0xff]  ;;  %v3107_v47 = vpack.c.bf16 %v105_v32, %v104_v31 }
  0x1e   :  { %2299 = vmatprep.subr.msk.bf16.mxu0 %vm2634_vm1, %v2821_v53  ;;  %v137_v46 = vld [vmem:[%s3873_s1 + $0x3a8] sm:$0xff]  ;;  %v3114_v48 = vld [vmem:[%s3874_s0 + $0x18] sm:$0xff]  ;;  %v3116_v49 = vpack.c.bf16 %v119_v35, %v118_v34  ;;  %v88_v56 = vld [vmem:[%s3873_s1 + $0x220] sm:$0xff] }
  0x1f   :  { %2344 = vmatpush3.bf16.xpose.msk.msra.mxu1 %vm2634_vm1, %v2823_v54  ;;  %v3120_v52 = vpack.c.bf16 %v137_v46, %v136_v44  ;;  %v89_v60 = vld [vmem:[%s3873_s1 + $0x228] sm:$0xff]  ;;  %v106_v61 = vld [vmem:[%s3873_s1 + $0x2b0] sm:$0xff]  ;;  %v107_v63 = vld [vmem:[%s3873_s1 + $0x2b8] sm:$0xff] }
  0x20   :  { %2347 = vmatprep.subr.msk.bf16.mxu1 %vm2634_vm1, %v2825_v55  ;;  %v120_v0 = vld [vmem:[%s3873_s1 + $0x320] sm:$0xff]  ;;  %v121_v6 = vld [vmem:[%s3873_s1 + $0x328] sm:$0xff]  ;;  %v3162_v8 = vpack.c.bf16 %v89_v60, %v88_v56  ;;  %v138_v10 = vld [vmem:[%s3873_s1 + $0x3b0] sm:$0xff]  ;;  %v3172_v24 = vpack.c.bf16 %v107_v63, %v106_v61 }
  0x21   :  { %v139_v13 = vld [vmem:[%s3873_s1 + $0x3b8] sm:$0xff]  ;;  %v3176_v26 = vpack.c.bf16 %v121_v6, %v120_v0  ;;  %v90_v32 = vld [vmem:[%s3873_s1 + $0x230] sm:$0xff]  ;;  %v108_v35 = vld [vmem:[%s3873_s1 + $0x2c0] sm:$0xff] }
  0x22   :  { %v3180_v31 = vpack.c.bf16 %v139_v13, %v138_v10  ;;  %v91_v34 = vld [vmem:[%s3873_s1 + $0x238] sm:$0xff]  ;;  %v109_v44 = vld [vmem:[%s3873_s1 + $0x2c8] sm:$0xff]  ;;  %v122_v46 = vld [vmem:[%s3873_s1 + $0x330] sm:$0xff] }
  0x23   :  { %v123_v56 = vld [vmem:[%s3873_s1 + $0x338] sm:$0xff]  ;;  %v3212_v60 = vpack.c.bf16 %v91_v34, %v90_v32  ;;  %v140_v61 = vld [vmem:[%s3873_s1 + $0x3c0] sm:$0xff]  ;;  %v141_v63 = vld [vmem:[%s3873_s1 + $0x3c8] sm:$0xff]  ;;  %v3220_v0 = vpack.c.bf16 %v109_v44, %v108_v35 }
  0x24   :  { %v3222_v6 = vpack.c.bf16 %v123_v56, %v122_v46  ;;  %v3224_v10 = vpack.c.bf16 %v141_v63, %v140_v61  ;;  %v92_v13 = vld [vmem:[%s3873_s1 + $0x240] sm:$0xff]  ;;  %v93_v32 = vld [vmem:[%s3873_s1 + $0x248] sm:$0xff]  ;;  %v110_v34 = vld [vmem:[%s3873_s1 + $0x2d0] sm:$0xff] }
  0x25   :  { %2302 = vmatpush3.bf16.xpose.msk.msra.mxu0 %vm2634_vm1, %v2857_v62  ;;  %3895 = vst [vmem:[#allocation2_spill] sm:$0xff] %v3220_v0  ;;  %v111_v35 = vld [vmem:[%s3873_s1 + $0x2d8] sm:$0xff]  ;;  %v124_v44 = vld [vmem:[%s3873_s1 + $0x340] sm:$0xff]  ;;  %v125_v46 = vld [vmem:[%s3873_s1 + $0x348] sm:$0xff]  ;;  %v3256_v56 = vpack.c.bf16 %v93_v32, %v92_v13 }
  0x26   :  { %2305 = vmatprep.subr.msk.bf16.mxu0 %vm2634_vm1, %v2865_v1  ;;  %3896 = vst [vmem:[#allocation3_spill] sm:$0xff] %v3222_v6  ;;  %3897 = vst [vmem:[#allocation4_spill] sm:$0xff] %v3224_v10  ;;  %v142_v61 = vld [vmem:[%s3873_s1 + $0x3d0] sm:$0xff]  ;;  %v143_v63 = vld [vmem:[%s3873_s1 + $0x3d8] sm:$0xff] }
  0x27   :  { %2350 = vmatpush3.bf16.xpose.msk.msra.mxu1 %vm2634_vm1, %v2867_v4  ;;  %3898 = vst [vmem:[#allocation5_spill] sm:$0xff] %v3256_v56  ;;  %v94_v13 = vld [vmem:[%s3873_s1 + $0x250] sm:$0xff]  ;;  %v95_v32 = vld [vmem:[%s3873_s1 + $0x258] sm:$0xff] }
  0x28   :  { %2353 = vmatprep.subr.msk.bf16.mxu1 %vm2634_vm1, %v2869_v5 }
  0x2d   :  { %2308 = vmatpush3.bf16.xpose.msk.msra.mxu0 %vm2634_vm1, %v2901_v16 }
  0x2e   :  { %2311 = vmatprep.subr.msk.bf16.mxu0 %vm2634_vm1, %v2909_v19 }
  0x2f   :  { %2356 = vmatpush3.bf16.xpose.msk.msra.mxu1 %vm2634_vm1, %v2911_v21 }
  0x30   :  { %2359 = vmatprep.subr.msk.bf16.mxu1 %vm2634_vm1, %v2913_v22 }
  0x35   :  { %2314 = vmatpush3.bf16.xpose.msk.msra.mxu0 %vm2634_vm1, %v2945_v33 }
  0x36   :  { %2317 = vmatprep.subr.msk.bf16.mxu0 %vm2634_vm1, %v2953_v36 }
  0x37   :  { %2362 = vmatpush3.bf16.xpose.msk.msra.mxu1 %vm2634_vm1, %v2955_v38 }
  0x38   :  { %2365 = vmatprep.subr.msk.bf16.mxu1 %vm2634_vm1, %v2957_v39 }
  0x3d   :  { %2320 = vmatpush3.bf16.xpose.msk.msra.mxu0 %vm2634_vm1, %v2989_v51 }
  0x3e   :  { %2371 = vmatprep.subr.msk.bf16.mxu0 %vm2634_vm1, %v2997_v57 }
  0x3f   :  { %2368 = vmatpush3.bf16.xpose.msk.msra.mxu1 %vm2634_vm1, %v2999_v58 }
  0x40   :  { %2419 = vmatprep.subr.msk.bf16.mxu1 %vm2634_vm1, %v3001_v59 }
  0x44   :  { %1970 = vmatmul.mubr.msk.f32.vlgmr.msra.gmra.mrb[0].mxu0 %vm149_vm0, %v2789_v45 }
  0x45   :  { %2374 = vmatpush3.bf16.xpose.msk.msra.mxu0 %vm2634_vm1, %v3033_v9  ;;  %1971 = vmatprep.mubr.msk.f32.mxu0 %vm149_vm0, %v3046_v17 }
  0x46   :  { %2010 = vmatmul.mubr.msk.f32.vlgmr.msra.gmra.mrb[0].mxu1 %vm149_vm0, %v2789_v45  ;;  %2377 = vmatprep.subr.msk.bf16.mxu0 %vm2634_vm1, %v3041_v14 }
  0x47   :  { %2422 = vmatpush3.bf16.xpose.msk.msra.mxu1 %vm2634_vm1, %v3048_v18  ;;  %2011 = vmatprep.mubr.msk.f32.mxu1 %vm149_vm0, %v3046_v17 }
  0x48   :  { %2425 = vmatprep.subr.msk.bf16.mxu1 %vm2634_vm1, %v3052_v23  ;;  %1972 = vmatmul.mubr.msk.f32.gmra.mrb[2].mxu0 %vm149_vm0, %v3046_v17 }
  0x49   :  { %1973 = vmatprep.mubr.msk.f32.mxu0 %vm149_vm0, %v3073_v27 }
  0x4a   :  { %2012 = vmatmul.mubr.msk.f32.gmra.mrb[2].mxu1 %vm149_vm0, %v3046_v17 }
  0x4b   :  { %2013 = vmatprep.mubr.msk.f32.mxu1 %vm149_vm0, %v3073_v27 }
  0x4c   :  { %1974 = vmatmul.mubr.msk.f32.gmra.mrb[4].mxu0 %vm149_vm0, %v3073_v27 }
  0x4d   :  { %2380 = vmatpush3.bf16.xpose.msk.msra.mxu0 %vm2634_vm1, %v3097_v43  ;;  %1975 = vmatprep.mubr.msk.f32.mxu0 %vm149_vm0, %v3114_v48 }
  0x4e   :  { %2383 = vmatprep.subr.msk.bf16.mxu0 %vm2634_vm1, %v3107_v47  ;;  %2014 = vmatmul.mubr.msk.f32.gmra.mrb[4].mxu1 %vm149_vm0, %v3073_v27 }
  0x4f   :  { %2428 = vmatpush3.bf16.xpose.msk.msra.mxu1 %vm2634_vm1, %v3116_v49  ;;  %2015 = vmatprep.mubr.msk.f32.mxu1 %vm149_vm0, %v3114_v48 }
  0x50   :  { %2431 = vmatprep.subr.msk.bf16.mxu1 %vm2634_vm1, %v3120_v52  ;;  %1976 = vmatmul.mubr.msk.f32.gmra.mrb[6].mxu0 %vm149_vm0, %v3114_v48 }
  0x51   :  { %2049 = vmatprep.mubr.msk.f32.mxu0 %vm149_vm0, %v2789_v45 }
  0x52   :  { %2016 = vmatmul.mubr.msk.f32.gmra.mrb[6].mxu1 %vm149_vm0, %v3114_v48 }
  0x53   :  { %2089 = vmatprep.mubr.msk.f32.mxu1 %vm149_vm0, %v2789_v45 }
  0x55   :  { %2386 = vmatpush3.bf16.xpose.msk.msra.mxu0 %vm2634_vm1, %v3162_v8 }
  0x56   :  { %2389 = vmatprep.subr.msk.bf16.mxu0 %vm2634_vm1, %v3172_v24 }
  0x57   :  { %2434 = vmatpush3.bf16.xpose.msk.msra.mxu1 %vm2634_vm1, %v3176_v26 }
  0x58   :  { %2437 = vmatprep.subr.msk.bf16.mxu1 %vm2634_vm1, %v3180_v31 }
  0x5d   :  { %2392 = vmatpush3.bf16.xpose.msk.msra.mxu0 %vm2634_vm1, %v3212_v60 }
  0x5e   :  { %2395 = vmatprep.subr.msk.bf16.mxu0 %vm2634_vm1, %v3220_v0  ;;  %v3264_v0 = vpack.c.bf16 %v111_v35, %v110_v34  ;;  %v112_v34 = vld [vmem:[%s3873_s1 + $0x2e0] sm:$0xff]  ;;  %v113_v35 = vld [vmem:[%s3873_s1 + $0x2e8] sm:$0xff] }
  0x5f   :  { %2440 = vmatpush3.bf16.xpose.msk.msra.mxu1 %vm2634_vm1, %v3222_v6  ;;  %v3268_v6 = vpack.c.bf16 %v143_v63, %v142_v61  ;;  %v3300_v61 = vpack.c.bf16 %v95_v32, %v94_v13  ;;  %v144_v63 = vld [vmem:[%s3873_s1 + $0x3e0] sm:$0xff]  ;;  %v97_v32 = vld [vmem:[%s3873_s1 + $0x268] sm:$0xff] }
  0x60   :  { %2443 = vmatprep.subr.msk.bf16.mxu1 %vm2634_vm1, %v3224_v10  ;;  %3899 = vst [vmem:[#allocation6_spill] sm:$0xff] %v3264_v0  ;;  %v3266_v10 = vpack.c.bf16 %v125_v46, %v124_v44  ;;  %v126_v44 = vld [vmem:[%s3873_s1 + $0x350] sm:$0xff]  ;;  %v127_v46 = vld [vmem:[%s3873_s1 + $0x358] sm:$0xff]  ;;  %v96_v13 = vld [vmem:[%s3873_s1 + $0x260] sm:$0xff] }
  0x61   :  { %3901 = vst [vmem:[#allocation8_spill] sm:$0xff] %v3268_v6  ;;  %3902 = vst [vmem:[#allocation9_spill] sm:$0xff] %v3300_v61 }
  0x62   :  { %3900 = vst [vmem:[#allocation7_spill] sm:$0xff] %v3266_v10 }
  0x65   :  { %2398 = vmatpush3.bf16.xpose.msk.msra.mxu0 %vm2634_vm1, %v3256_v56 }
  0x66   :  { %2401 = vmatprep.subr.msk.bf16.mxu0 %vm2634_vm1, %v3264_v0  ;;  %v145_v0 = vld [vmem:[%s3873_s1 + $0x3e8] sm:$0xff] }
  0x67   :  { %2446 = vmatpush3.bf16.xpose.msk.msra.mxu1 %vm2634_vm1, %v3266_v10  ;;  %v3308_v10 = vpack.c.bf16 %v113_v35, %v112_v34  ;;  %v3312_v56 = vpack.c.bf16 %v145_v0, %v144_v63  ;;  %v114_v0 = vld [vmem:[%s3873_s1 + $0x2f0] sm:$0xff]  ;;  %v115_v34 = vld [vmem:[%s3873_s1 + $0x2f8] sm:$0xff]  ;;  %v128_v35 = vld [vmem:[%s3873_s1 + $0x360] sm:$0xff] }
  0x68   :  { %2449 = vmatprep.subr.msk.bf16.mxu1 %vm2634_vm1, %v3268_v6  ;;  %v3310_v6 = vpack.c.bf16 %v127_v46, %v126_v44  ;;  %v129_v44 = vld [vmem:[%s3873_s1 + $0x368] sm:$0xff]  ;;  %v3344_v46 = vpack.c.bf16 %v97_v32, %v96_v13  ;;  %v146_v63 = vld [vmem:[%s3873_s1 + $0x3f0] sm:$0xff]  ;;  %v99_v32 = vld [vmem:[%s3873_s1 + $0x278] sm:$0xff] }
  0x69   :  { %3903 = vst [vmem:[#allocation10_spill] sm:$0xff] %v3308_v10  ;;  %3905 = vst [vmem:[#allocation12_spill] sm:$0xff] %v3312_v56  ;;  %v98_v13 = vld [vmem:[%s3873_s1 + $0x270] sm:$0xff] }
  0x6a   :  { %3904 = vst [vmem:[#allocation11_spill] sm:$0xff] %v3310_v6 }
  0x6d   :  { %2404 = vmatpush3.bf16.xpose.msk.msra.mxu0 %vm2634_vm1, %v3300_v61 }
  0x6e   :  { %2407 = vmatprep.subr.msk.bf16.mxu0 %vm2634_vm1, %v3308_v10  ;;  %v147_v10 = vld [vmem:[%s3873_s1 + $0x3f8] sm:$0xff] }
  0x6f   :  { %2452 = vmatpush3.bf16.xpose.msk.msra.mxu1 %vm2634_vm1, %v3310_v6  ;;  %v3352_v6 = vpack.c.bf16 %v115_v34, %v114_v0  ;;  %v3356_v61 = vpack.c.bf16 %v147_v10, %v146_v63  ;;  %v130_v10 = vld [vmem:[%s3873_s1 + $0x370] sm:$0xff]  ;;  %v131_v0 = vld [vmem:[%s3873_s1 + $0x378] sm:$0xff]  ;;  %v3382_v34 = vpack.c.bf16 %v99_v32, %v98_v13 }
  0x70   :  { %2455 = vmatprep.subr.msk.bf16.mxu1 %vm2634_vm1, %v3312_v56  ;;  %v3354_v56 = vpack.c.bf16 %v129_v44, %v128_v35  ;;  %v3384_v35 = vpack.c.bf16 %v131_v0, %v130_v10 }
  0x71   :  { %3906 = vst [vmem:[#allocation13_spill] sm:$0xff] %v3356_v61  ;;  %3907 = vst [vmem:[#allocation14_spill] sm:$0xff] %v3382_v34 }
  0x72   :  { %3908 = vst [vmem:[#allocation15_spill] sm:$0xff] %v3384_v35 }
  0x75   :  { %2410 = vmatpush3.bf16.xpose.msk.msra.mxu0 %vm2634_vm1, %v3344_v46 }
  0x76   :  { %2413 = vmatprep.subr.msk.bf16.mxu0 %vm2634_vm1, %v3352_v6 }
  0x77   :  { %2458 = vmatpush3.bf16.xpose.msk.msra.mxu1 %vm2634_vm1, %v3354_v56 }
  0x78   :  { %2461 = vmatprep.subr.msk.bf16.mxu1 %vm2634_vm1, %v3356_v61 }
  0x7d   :  { %2416 = vmatpush3.bf16.xpose.msk.msra.mxu0 %vm2634_vm1, %v3382_v34 }
  0x7e   :  { %2466 = vmatprep.subr.bf16.mxu0 %v2638_v3 }
  0x7f   :  { %2464 = vmatpush3.bf16.xpose.msk.msra.mxu1 %vm2634_vm1, %v3384_v35 }
  0x80   :  { %2498 = vmatprep.subr.bf16.mxu1 %v2663_v11 }
  0x84   :  { %2050 = vmatmul.mubr.msk.f32.vlgmr.msra.gmra.mrb[8].mxu0 %vm149_vm0, %v2789_v45 }
  0x85   :  { %2051 = vmatprep.mubr.msk.f32.mxu0 %vm149_vm0, %v3046_v17  ;;  %2468 = vmatpush3.bf16.msra.mxu0 %v2649_v7 }
  0x86   :  { %2090 = vmatmul.mubr.msk.f32.vlgmr.msra.gmra.mrb[8].mxu1 %vm149_vm0, %v2789_v45  ;;  %2470 = vmatprep.subr.bf16.mxu0 %v2676_v15 }
  0x87   :  { %2091 = vmatprep.mubr.msk.f32.mxu1 %vm149_vm0, %v3046_v17  ;;  %2500 = vmatpush3.bf16.msra.mxu1 %v2665_v12 }
  0x88   :  { %2052 = vmatmul.mubr.msk.f32.gmra.mrb[10].mxu0 %vm149_vm0, %v3046_v17  ;;  %2502 = vmatprep.subr.bf16.mxu1 %v2693_v20 }
  0x89   :  { %2053 = vmatprep.mubr.msk.f32.mxu0 %vm149_vm0, %v3073_v27  ;;  %2472 = vmatpush3.bf16.msra.mxu0 %v2716_v25 }
  0x8a   :  { %2092 = vmatmul.mubr.msk.f32.gmra.mrb[10].mxu1 %vm149_vm0, %v3046_v17  ;;  %2474 = vmatprep.subr.bf16.mxu0 %v2724_v28 }
  0x8b   :  { %2093 = vmatprep.mubr.msk.f32.mxu1 %vm149_vm0, %v3073_v27  ;;  %2504 = vmatpush3.bf16.msra.mxu1 %v2726_v29 }
  0x8c   :  { %2054 = vmatmul.mubr.msk.f32.gmra.mrb[12].mxu0 %vm149_vm0, %v3073_v27  ;;  %2506 = vmatprep.subr.bf16.mxu1 %v2728_v30 }
  0x8d   :  { %2055 = vmatprep.mubr.msk.f32.mxu0 %vm149_vm0, %v3114_v48  ;;  %2476 = vmatpush3.bf16.msra.mxu0 %v2760_v37 }
  0x8e   :  { %2094 = vmatmul.mubr.msk.f32.gmra.mrb[12].mxu1 %vm149_vm0, %v3073_v27  ;;  %2478 = vmatprep.subr.bf16.mxu0 %v2768_v40 }
  0x8f   :  { %2095 = vmatprep.mubr.msk.f32.mxu1 %vm149_vm0, %v3114_v48  ;;  %2508 = vmatpush3.bf16.msra.mxu1 %v2770_v41 }
  0x90   :  { %2056 = vmatmul.mubr.msk.f32.gmra.mrb[14].mxu0 %vm149_vm0, %v3114_v48  ;;  %2510 = vmatprep.subr.bf16.mxu1 %v2772_v42 }
  0x91   :  { %2480 = vmatpush3.bf16.msra.mxu0 %v2813_v50  ;;  %v3889_v50 = vlaneseq }
  0x92   :  { %2096 = vmatmul.mubr.msk.f32.gmra.mrb[14].mxu1 %vm149_vm0, %v3114_v48  ;;  %2482 = vmatprep.subr.bf16.mxu0 %v2821_v53 }
  0x93   :  { %2512 = vmatpush3.bf16.msra.mxu1 %v2823_v54  ;;  %v936_v53 = vshrl.u32 %v3889_v50, 7 }
  0x94   :  { %2514 = vmatprep.subr.bf16.mxu1 %v2825_v55 }
  0x95   :  { %2484 = vmatpush3.bf16.msra.mxu0 %v2857_v62  ;;  %v937_v54 = vsub.s32 0, %v936_v53  ;;  %v941_v55 = vsub.s32 1, %v936_v53  ;;  %v148_v62 = vld [vmem:[%s3875_s2] sm:$0xff]  ;;  %v953_v32 = vsub.s32 4, %v936_v53 }
  0x96   :  { %2486 = vmatprep.subr.bf16.mxu0 %v2865_v1  ;;  %v945_v1 = vsub.s32 2, %v936_v53 }
  0x97   :  { %2516 = vmatpush3.bf16.msra.mxu1 %v2867_v4 }
  0x98   :  { %2518 = vmatprep.subr.bf16.mxu1 %v2869_v5  ;;  %v938_v5 = vrot.slane %v148_v62, %v937_v54 }
  0x99   :  { %2488 = vmatpush3.bf16.msra.mxu0 %v2901_v16 }
  0x9a   :  { %2490 = vmatprep.subr.bf16.mxu0 %v2909_v19  ;;  %v942_v19 = vrot.slane %v148_v62, %v941_v55 }
  0x9b   :  { %2520 = vmatpush3.bf16.msra.mxu1 %v2911_v21  ;;  %v946_v21 = vrot.slane %v148_v62, %v945_v1  ;;  %v3486_v1 = vrot.slane %v148_v62, %v953_v32 }
  0x9c   :  { %2522 = vmatprep.subr.bf16.mxu1 %v2913_v22 }
  0x9d   :  { %2492 = vmatpush3.bf16.msra.mxu0 %v2945_v33 }
  0x9e   :  { %2494 = vmatprep.subr.bf16.mxu0 %v2953_v36 }
  0x9f   :  { %2524 = vmatpush3.bf16.msra.mxu1 %v2955_v38  ;;  %v949_v38 = vsub.s32 3, %v936_v53 }
  0xa0   :  { %2526 = vmatprep.subr.bf16.mxu1 %v2957_v39 }
  0xa1   :  { %2496 = vmatpush3.bf16.msra.mxu0 %v2989_v51  ;;  %v3468_v48 = vrot.slane %v148_v62, %v949_v38 }
  0xa2   :  { %2530 = vmatprep.subr.bf16.mxu0 %v2997_v57 }
  0xa3   :  { %2528 = vmatpush3.bf16.msra.mxu1 %v2999_v58 }
  0xa4   :  { %2562 = vmatprep.subr.bf16.mxu1 %v3001_v59 }
 0x117   :  { %v612_v2 = vpop.f32.mrb[0].mxu0 }
 0x118   :  { %v614_v3 = vpop.f32.mrb[1].mxu0  ;;  %v902_v4 = vmul.f32 2.0, %v612_v2 }
 0x119   :  { %v701_v7 = vpop.f32.mrb[0].mxu1  ;;  %v903_v16 = vmul.f32 2.0, %v614_v3  ;;  %v957_v3 = vsub.s32 5, %v936_v53 }
 0x11a   :  { %v703_v11 = vpop.f32.mrb[1].mxu1  ;;  %v3460_v22 = vsub.f32 %v938_v5, %v902_v4  ;;  %v904_v36 = vmul.f32 2.0, %v701_v7 }
 0x11b   :  { %v618_v12 = vpop.f32.mrb[2].mxu0  ;;  %v3462_v33 = vsub.f32 %v942_v19, %v903_v16  ;;  %v905_v27 = vmul.f32 2.0, %v703_v11  ;;  %v961_v11 = vsub.s32 6, %v936_v53  ;;  %v3492_v38 = vrot.slane %v148_v62, %v957_v3 }
 0x11c   :  { %v620_v15 = vpop.f32.mrb[3].mxu0  ;;  %v910_v39 = vmul.f32 2.0, %v618_v12  ;;  %v3466_v17 = vsub.f32 %v946_v21, %v904_v36 }
 0x11d   :  { %v707_v20 = vpop.f32.mrb[2].mxu1  ;;  %v911_v51 = vmul.f32 2.0, %v620_v15  ;;  %v1007_v59 = vmin.f32 %v3460_v22, %v3462_v33  ;;  %v3480_v12 = vsub.f32 %v3468_v48, %v905_v27  ;;  %v965_v15 = vsub.s32 7, %v936_v53 }
 0x11e   :  { %v709_v25 = vpop.f32.mrb[3].mxu1  ;;  %v3470_v44 = vsub.f32 %v938_v5, %v910_v39  ;;  %v912_v13 = vmul.f32 2.0, %v707_v20  ;;  %v3495_v39 = vrot.slane %v148_v62, %v961_v11 }
 0x11f   :  { %v624_v28 = vpop.f32.mrb[4].mxu0  ;;  %v3472_v63 = vsub.f32 %v942_v19, %v911_v51  ;;  %v1008_v7 = vmin.f32 %v1007_v59, %v3466_v17  ;;  %v913_v55 = vmul.f32 2.0, %v709_v25  ;;  %v3497_v51 = vrot.slane %v148_v62, %v965_v15 }
 0x120   :  { %v626_v29 = vpop.f32.mrb[5].mxu0  ;;  %v918_v57 = vmul.f32 2.0, %v624_v28  ;;  %v3484_v20 = vsub.f32 %v946_v21, %v912_v13 }
 0x121   :  { %v713_v30 = vpop.f32.mrb[4].mxu1  ;;  %v919_v58 = vmul.f32 2.0, %v626_v29  ;;  %v1016_v54 = vmin.f32 %v3470_v44, %v3472_v63  ;;  %v3505_v13 = vsub.f32 %v3468_v48, %v913_v55 }
 0x122   :  { %v715_v37 = vpop.f32.mrb[5].mxu1  ;;  %v3474_v10 = vsub.f32 %v938_v5, %v918_v57  ;;  %v920_v2 = vmul.f32 2.0, %v713_v30 }
 0x123   :  { %v630_v40 = vpop.f32.mrb[6].mxu0  ;;  %v3476_v0 = vsub.f32 %v942_v19, %v919_v58  ;;  %v921_v16 = vmul.f32 2.0, %v715_v37  ;;  %v1017_v37 = vmin.f32 %v1016_v54, %v3484_v20 }
 0x124   :  { %v632_v41 = vpop.f32.mrb[7].mxu0  ;;  %v926_v28 = vmul.f32 2.0, %v630_v40  ;;  %v3490_v4 = vsub.f32 %v946_v21, %v920_v2  ;;  %v1009_v40 = vmin.f32 %v1008_v7, %v3480_v12 }
 0x125   :  { %v719_v42 = vpop.f32.mrb[6].mxu1  ;;  %v927_v29 = vmul.f32 2.0, %v632_v41  ;;  %v1025_v30 = vmin.f32 %v3474_v10, %v3476_v0 }
 0x126   :  { %v3454_v45 = vpop.f32.mrb[7].mxu1  ;;  %v3499_v25 = vsub.f32 %v938_v5, %v926_v28  ;;  %v928_v58 = vmul.f32 2.0, %v719_v42  ;;  %v3512_v5 = vsub.f32 %v3468_v48, %v921_v16 }
 0x127   :  { %v3501_v57 = vsub.f32 %v942_v19, %v927_v29  ;;  %v1026_v62 = vmin.f32 %v1025_v30, %v3490_v4  ;;  %v929_v30 = vmul.f32 2.0, %v3454_v45 }
 0x128   :  { %v3523_v55 = vsub.f32 %v946_v21, %v928_v58 }
 0x129   :  { %v1034_v54 = vmin.f32 %v3499_v25, %v3501_v57 }
 0x157   :  { %v790_v36 = vpop.f32.mrb[8].mxu0 }
 0x158   :  { %v906_v41 = vmul.f32 2.0, %v790_v36  ;;  %v792_v53 = vpop.f32.mrb[9].mxu0 }
 0x159   :  { %v907_v59 = vmul.f32 2.0, %v792_v53  ;;  %v879_v27 = vpop.f32.mrb[8].mxu1 }
 0x15a   :  { %v3508_v32 = vsub.f32 %v3486_v1, %v906_v41  ;;  %v908_v2 = vmul.f32 2.0, %v879_v27  ;;  %v881_v3 = vpop.f32.mrb[9].mxu1  ;;  %v1018_v41 = vmin.f32 %v1017_v37, %v3505_v13 }
 0x15b   :  { %v3515_v19 = vsub.f32 %v3492_v38, %v907_v59  ;;  %v796_v42 = vpop.f32.mrb[10].mxu0  ;;  %v909_v7 = vmul.f32 2.0, %v881_v3 }
 0x15c   :  { %v1010_v11 = vmin.f32 %v1009_v40, %v3508_v32  ;;  %v3519_v15 = vsub.f32 %v3495_v39, %v908_v2  ;;  %v914_v28 = vmul.f32 2.0, %v796_v42  ;;  %v798_v29 = vpop.f32.mrb[11].mxu0  ;;  %v1027_v2 = vmin.f32 %v1026_v62, %v3512_v5 }
 0x15d   :  { %v915_v16 = vmul.f32 2.0, %v798_v29  ;;  %v885_v36 = vpop.f32.mrb[10].mxu1  ;;  %v3536_v45 = vsub.f32 %v3497_v51, %v909_v7  ;;  %v3545_v62 = vsub.f32 %v3468_v48, %v929_v30 }
 0x15e   :  { %v3528_v53 = vsub.f32 %v3486_v1, %v914_v28  ;;  %v916_v40 = vmul.f32 2.0, %v885_v36  ;;  %v887_v59 = vpop.f32.mrb[11].mxu1  ;;  %v1011_v27 = vmin.f32 %v1010_v11, %v3515_v19  ;;  %v1035_v11 = vmin.f32 %v1034_v54, %v3523_v55 }
 0x15f   :  { %v3533_v3 = vsub.f32 %v3492_v38, %v915_v16  ;;  %v802_v21 = vpop.f32.mrb[12].mxu0  ;;  %v917_v58 = vmul.f32 2.0, %v887_v59 }
 0x160   :  { %v1019_v42 = vmin.f32 %v1018_v41, %v3528_v53  ;;  %v922_v37 = vmul.f32 2.0, %v802_v21  ;;  %v3540_v28 = vsub.f32 %v3495_v39, %v916_v40  ;;  %v804_v29 = vpop.f32.mrb[13].mxu0  ;;  %v1012_v36 = vmin.f32 %v1011_v27, %v3519_v15 }
 0x161   :  { %v923_v16 = vmul.f32 2.0, %v804_v29  ;;  %v3548_v59 = vsub.f32 %v3497_v51, %v917_v58  ;;  %v891_v7 = vpop.f32.mrb[12].mxu1 }
 0x162   :  { %v1020_v50 = vmin.f32 %v1019_v42, %v3533_v3  ;;  %v3552_v41 = vsub.f32 %v3486_v1, %v922_v37  ;;  %v924_v40 = vmul.f32 2.0, %v891_v7  ;;  %v1013_v21 = vmin.f32 %v1012_v36, %v3536_v45  ;;  %v893_v35 = vpop.f32.mrb[13].mxu1 }
 0x163   :  { %v3556_v27 = vsub.f32 %v3492_v38, %v923_v16  ;;  %v808_v54 = vpop.f32.mrb[14].mxu0  ;;  %v925_v48 = vmul.f32 2.0, %v893_v35  ;;  %v1036_v7 = vmin.f32 %v1035_v11, %v3545_v62 }
 0x164   :  { %v1028_v30 = vmin.f32 %v1027_v2, %v3552_v41  ;;  %v930_v29 = vmul.f32 2.0, %v808_v54  ;;  %v3560_v58 = vsub.f32 %v3495_v39, %v924_v40  ;;  %1014 = vmin.xlane.f32.xlu0 %v1013_v21  ;;  %v810_v42 = vpop.f32.mrb[15].mxu0  ;;  %v1021_v37 = vmin.f32 %v1020_v50, %v3540_v28 }
 0x165   :  { %v931_v34 = vmul.f32 2.0, %v810_v42  ;;  %v897_v36 = vpop.f32.mrb[14].mxu1  ;;  %v3565_v61 = vsub.f32 %v3497_v51, %v925_v48 }
 0x166   :  { %v3568_v16 = vsub.f32 %v3486_v1, %v930_v29  ;;  %v932_v35 = vmul.f32 2.0, %v897_v36  ;;  %v1022_v2 = vmin.f32 %v1021_v37, %v3548_v59  ;;  %v899_v54 = vpop.f32.mrb[15].mxu1  ;;  %v1029_v40 = vmin.f32 %v1028_v30, %v3556_v27 }
 0x167   :  { %v3573_v21 = vsub.f32 %v3492_v38, %v931_v34  ;;  %v933_v50 = vmul.f32 2.0, %v899_v54  ;;  %v3909_v30 = vlaneseq }
 0x168   :  { %v1037_v11 = vmin.f32 %v1036_v7, %v3568_v16  ;;  %v3577_v42 = vsub.f32 %v3495_v39, %v932_v35  ;;  %1023 = vmin.xlane.f32.xlu0 %v1022_v2  ;;  %v1030_v48 = vmin.f32 %v1029_v40, %v3560_v58 }
 0x169   :  { %v3582_v29 = vsub.f32 %v3497_v51, %v933_v50  ;;  %v3588_v7 = vand.u32 127, %v3909_v30 }
 0x16a   :  { %v1038_v1 = vmin.f32 %v1037_v11, %v3573_v21  ;;  %v1031_v37 = vmin.f32 %v1030_v48, %v3565_v61 }
 0x16b   :  { %v3591_v39 = vadd.s32 128, %v3588_v7  ;;  %v3596_v51 = vadd.s32 256, %v3588_v7  ;;  %v3599_v35 = vadd.s32 384, %v3588_v7  ;;  %v3602_v2 = vadd.s32 512, %v3588_v7 }
 0x16c   :  { %1032 = vmin.xlane.f32.xlu1 %v1031_v37  ;;  %v1039_v34 = vmin.f32 %v1038_v1, %v3577_v42  ;;  %v3605_v54 = vadd.s32 640, %v3588_v7  ;;  %v3614_v11 = vadd.s32 896, %v3588_v7 }
 0x16e   :  { %v1040_v38 = vmin.f32 %v1039_v34, %v3582_v29 }
 0x170   :  { %1041 = vmin.xlane.f32.xlu1 %v1040_v38 }
 0x1f1   :  { %v1015_v36 = vpop.xlane.xlu0 %1014 }
 0x1f2   :  { %vm1052_vm2 = vcmp.eq.f32.partialorder %v3460_v22, %v1015_v36  ;;  %vm1053_vm3 = vcmp.eq.f32.partialorder %v3462_v33, %v1015_v36  ;;  %vm1054_vm4 = vcmp.eq.f32.partialorder %v3466_v17, %v1015_v36  ;;  %v3611_v33 = vadd.s32 768, %v3588_v7 }
 0x1f3   :  { %v1084_v40 = vsel %vm1052_vm2, %v3588_v7, 1024  ;;  %v1085_v22 = vsel %vm1053_vm3, %v3591_v39, 1024  ;;  %vm1055_vm5 = vcmp.eq.f32.partialorder %v3480_v12, %v1015_v36  ;;  %vm1056_vm6 = vcmp.eq.f32.partialorder %v3508_v32, %v1015_v36 }
 0x1f4   :  { %vm1057_vm7 = vcmp.eq.f32.partialorder %v3515_v19, %v1015_v36  ;;  %vm1116_vm8 = vcmp.lt.s32.totalorder %v1084_v40, %v1085_v22  ;;  %vm1058_vm11 = vcmp.eq.f32.partialorder %v3519_v15, %v1015_v36  ;;  %vm1059_vm12 = vcmp.eq.f32.partialorder %v3536_v45, %v1015_v36 }
 0x1f5   :  { %v1024_v50 = vpop.xlane.xlu0 %1023  ;;  %v1086_v17 = vsel %vm1054_vm4, %v3596_v51, 1024  ;;  %v1117_v48 = vsel %vm1116_vm8, %v1084_v40, %v1085_v22  ;;  %v1087_v1 = vsel %vm1055_vm5, %v3599_v35, 1024  ;;  %v1088_v12 = vsel %vm1056_vm6, %v3602_v2, 1024 }
 0x1f6   :  { %vm1060_vm9 = vcmp.eq.f32.partialorder %v3470_v44, %v1024_v50  ;;  %vm1061_vm10 = vcmp.eq.f32.partialorder %v3472_v63, %v1024_v50  ;;  %vm1118_vm13 = vcmp.lt.s32.totalorder %v1117_v48, %v1086_v17  ;;  %v1089_v19 = vsel %vm1057_vm7, %v3605_v54, 1024 }
 0x1f7   :  { %v1092_v32 = vsel %vm1060_vm9, %v3588_v7, 1024  ;;  %v1119_v37 = vsel %vm1118_vm13, %v1117_v48, %v1086_v17  ;;  %vm1062_vm14 = vcmp.eq.f32.partialorder %v3484_v20, %v1024_v50  ;;  %v1093_v44 = vsel %vm1061_vm10, %v3591_v39, 1024 }
 0x1f8   :  { %v1090_v15 = vsel %vm1058_vm11, %v3611_v33, 1024  ;;  %v1091_v45 = vsel %vm1059_vm12, %v3614_v11, 1024  ;;  %vm1120_vm15 = vcmp.lt.s32.totalorder %v1119_v37, %v1087_v1  ;;  %vm1063_vm1 = vcmp.eq.f32.partialorder %v3505_v13, %v1024_v50 }
 0x1f9   :  { %v3630_v63 = vpop.xlane.xlu1 %1032  ;;  %v1121_v34 = vsel %vm1120_vm15, %v1119_v37, %v1087_v1  ;;  %vm1064_vm2 = vcmp.eq.f32.partialorder %v3528_v53, %v1024_v50  ;;  %vm1065_vm3 = vcmp.eq.f32.partialorder %v3533_v3, %v1024_v50  ;;  %vm1144_vm4 = vcmp.lt.s32.totalorder %v1092_v32, %v1093_v44 }
 0x1fa   :  { %vm1122_vm5 = vcmp.lt.s32.totalorder %v1121_v34, %v1088_v12  ;;  %vm1066_vm6 = vcmp.eq.f32.partialorder %v3540_v28, %v1024_v50  ;;  %v1094_v20 = vsel %vm1062_vm14, %v3596_v51, 1024  ;;  %v1145_v38 = vsel %vm1144_vm4, %v1092_v32, %v1093_v44 }
 0x1fb   :  { %v1123_v30 = vsel %vm1122_vm5, %v1121_v34, %v1088_v12  ;;  %vm1146_vm7 = vcmp.lt.s32.totalorder %v1145_v38, %v1094_v20  ;;  %vm1068_vm8 = vcmp.eq.f32.partialorder %v3474_v10, %v3630_v63  ;;  %vm1069_vm9 = vcmp.eq.f32.partialorder %v3476_v0, %v3630_v63 }
 0x1fc   :  { %vm1124_vm10 = vcmp.lt.s32.totalorder %v1123_v30, %v1089_v19  ;;  %vm1067_vm11 = vcmp.eq.f32.partialorder %v3548_v59, %v1024_v50  ;;  %v1095_v13 = vsel %vm1063_vm1, %v3599_v35, 1024  ;;  %v1147_v36 = vsel %vm1146_vm7, %v1145_v38, %v1094_v20 }
 0x1fd   :  { %v1125_v40 = vsel %vm1124_vm10, %v1123_v30, %v1089_v19  ;;  %v1096_v22 = vsel %vm1064_vm2, %v3602_v2, 1024  ;;  %v1097_v17 = vsel %vm1065_vm3, %v3605_v54, 1024  ;;  %vm1148_vm12 = vcmp.lt.s32.totalorder %v1147_v36, %v1095_v13  ;;  %v3658_v53 = vpop.xlane.xlu1 %1041 }
 0x1fe   :  { %vm1126_vm13 = vcmp.lt.s32.totalorder %v1125_v40, %v1090_v15  ;;  %v1149_v10 = vsel %vm1148_vm12, %v1147_v36, %v1095_v13  ;;  %v1100_v0 = vsel %vm1068_vm8, %v3588_v7, 1024  ;;  %v1101_v48 = vsel %vm1069_vm9, %v3591_v39, 1024 }
 0x1ff   :  { %v1127_v1 = vsel %vm1126_vm13, %v1125_v40, %v1090_v15  ;;  %v1098_v12 = vsel %vm1066_vm6, %v3611_v33, 1024  ;;  %vm1150_vm14 = vcmp.lt.s32.totalorder %v1149_v10, %v1096_v22  ;;  %vm1070_vm15 = vcmp.eq.f32.partialorder %v3490_v4, %v3630_v63 }
 0x200   :  { %vm1128_vm1 = vcmp.lt.s32.totalorder %v1127_v1, %v1091_v45  ;;  %v1099_v3 = vsel %vm1067_vm11, %v3614_v11, 1024  ;;  %v1151_v32 = vsel %vm1150_vm14, %v1149_v10, %v1096_v22  ;;  %vm1071_vm2 = vcmp.eq.f32.partialorder %v3512_v5, %v3630_v63 }
 0x201   :  { %v3665_v19 = vsel %vm1128_vm1, %v1127_v1, %v1091_v45  ;;  %vm1152_vm3 = vcmp.lt.s32.totalorder %v1151_v32, %v1097_v17  ;;  %vm1072_vm4 = vcmp.eq.f32.partialorder %v3552_v41, %v3630_v63  ;;  %vm1172_vm5 = vcmp.lt.s32.totalorder %v1100_v0, %v1101_v48 }
 0x202   :  { %v1131_v4 = vshra.s32 %v3665_v19, 16  ;;  %v1153_v28 = vsel %vm1152_vm3, %v1151_v32, %v1097_v17  ;;  %v1102_v37 = vsel %vm1070_vm15, %v3596_v51, 1024  ;;  %v1173_v44 = vsel %vm1172_vm5, %v1100_v0, %v1101_v48 }
 0x203   :  { %vm1154_vm6 = vcmp.lt.s32.totalorder %v1153_v28, %v1098_v12  ;;  %v1103_v59 = vsel %vm1071_vm2, %v3599_v35, 1024  ;;  %vm1174_vm7 = vcmp.lt.s32.totalorder %v1173_v44, %v1102_v37  ;;  %vm1076_vm8 = vcmp.eq.f32.partialorder %v3499_v25, %v3658_v53 }
 0x204   :  { %v3674_v5 = vcvt.s32.f32 %v1131_v4  ;;  %v1155_v50 = vsel %vm1154_vm6, %v1153_v28, %v1098_v12  ;;  %v1175_v15 = vsel %vm1174_vm7, %v1173_v44, %v1102_v37  ;;  %vm1077_vm9 = vcmp.eq.f32.partialorder %v3501_v57, %v3658_v53 }
 0x205   :  { %vm1156_vm10 = vcmp.lt.s32.totalorder %v1155_v50, %v1099_v3  ;;  %vm1073_vm11 = vcmp.eq.f32.partialorder %v3556_v27, %v3630_v63  ;;  %vm1176_vm12 = vcmp.lt.s32.totalorder %v1175_v15, %v1103_v59  ;;  %vm1074_vm13 = vcmp.eq.f32.partialorder %v3560_v58, %v3630_v63 }
 0x206   :  { %1134 = vmin.xlane.f32.xlu0 %v3674_v5  ;;  %v1157_v45 = vsel %vm1156_vm10, %v1155_v50, %v1099_v3  ;;  %v1104_v25 = vsel %vm1072_vm4, %v3602_v2, 1024  ;;  %v1177_v34 = vsel %vm1176_vm12, %v1175_v15, %v1103_v59  ;;  %v1108_v57 = vsel %vm1076_vm8, %v3588_v7, 1024 }
 0x207   :  { %v1159_v20 = vshra.s32 %v1157_v45, 16  ;;  %vm1178_vm14 = vcmp.lt.s32.totalorder %v1177_v34, %v1104_v25  ;;  %v1109_v38 = vsel %vm1077_vm9, %v3591_v39, 1024  ;;  %v1105_v27 = vsel %vm1073_vm11, %v3605_v54, 1024 }
 0x208   :  { %v1179_v30 = vsel %vm1178_vm14, %v1177_v34, %v1104_v25  ;;  %vm1078_vm15 = vcmp.eq.f32.partialorder %v3523_v55, %v3658_v53  ;;  %vm1075_vm1 = vcmp.eq.f32.partialorder %v3565_v61, %v3630_v63  ;;  %v1106_v41 = vsel %vm1074_vm13, %v3611_v33, 1024 }
 0x209   :  { %v1161_v13 = vcvt.s32.f32 %v1159_v20  ;;  %vm1180_vm2 = vcmp.lt.s32.totalorder %v1179_v30, %v1105_v27  ;;  %vm1079_vm3 = vcmp.eq.f32.partialorder %v3545_v62, %v3658_v53  ;;  %vm1200_vm4 = vcmp.lt.s32.totalorder %v1108_v57, %v1109_v38 }
 0x20a   :  { %v1181_v58 = vsel %vm1180_vm2, %v1179_v30, %v1105_v27  ;;  %v1110_v36 = vsel %vm1078_vm15, %v3596_v51, 1024  ;;  %v1201_v40 = vsel %vm1200_vm4, %v1108_v57, %v1109_v38  ;;  %v1107_v22 = vsel %vm1075_vm1, %v3614_v11, 1024 }
 0x20b   :  { %1162 = vmin.xlane.f32.xlu1 %v1161_v13  ;;  %vm1182_vm5 = vcmp.lt.s32.totalorder %v1181_v58, %v1106_v41  ;;  %vm1080_vm6 = vcmp.eq.f32.partialorder %v3568_v16, %v3658_v53  ;;  %vm1202_vm7 = vcmp.lt.s32.totalorder %v1201_v40, %v1110_v36  ;;  %v1111_v61 = vsel %vm1079_vm3, %v3599_v35, 1024 }
 0x20c   :  { %v1183_v55 = vsel %vm1182_vm5, %v1181_v58, %v1106_v41  ;;  %v1203_v63 = vsel %vm1202_vm7, %v1201_v40, %v1110_v36  ;;  %vm1081_vm9 = vcmp.eq.f32.partialorder %v3573_v21, %v3658_v53  ;;  %v1112_v10 = vsel %vm1080_vm6, %v3602_v2, 1024 }
 0x20d   :  { %vm1184_vm8 = vcmp.lt.s32.totalorder %v1183_v55, %v1107_v22  ;;  %vm1204_vm10 = vcmp.lt.s32.totalorder %v1203_v63, %v1111_v61  ;;  %vm1082_vm11 = vcmp.eq.f32.partialorder %v3577_v42, %v3658_v53  ;;  %v1113_v16 = vsel %vm1081_vm9, %v3605_v54, 1024 }
 0x20e   :  { %v1185_v17 = vsel %vm1184_vm8, %v1183_v55, %v1107_v22  ;;  %v1205_v0 = vsel %vm1204_vm10, %v1203_v63, %v1111_v61  ;;  %vm1083_vm13 = vcmp.eq.f32.partialorder %v3582_v29, %v3658_v53  ;;  %v1114_v21 = vsel %vm1082_vm11, %v3611_v33, 1024 }
 0x20f   :  { %v1187_v62 = vshra.s32 %v1185_v17, 16  ;;  %vm1206_vm12 = vcmp.lt.s32.totalorder %v1205_v0, %v1112_v10  ;;  %v1115_v3 = vsel %vm1083_vm13, %v3614_v11, 1024  ;;  %v1130_v37 = vand.u32 65535, %v3665_v19 }
 0x210   :  { %v1207_v1 = vsel %vm1206_vm12, %v1205_v0, %v1112_v10  ;;  %v1158_v29 = vand.u32 65535, %v1157_v45  ;;  %v1186_v34 = vand.u32 65535, %v1185_v17  ;;  %v2600_v63 = vmov 1.0   ;;  %v3913_v0 = vld [vmem:[#allocation5_spill] sm:$0xff] }
 0x211   :  { %v1189_v48 = vcvt.s32.f32 %v1187_v62  ;;  %vm1208_vm14 = vcmp.lt.s32.totalorder %v1207_v1, %v1113_v16  ;;  %v1132_v59 = vcvt.s32.f32 %v1130_v37 }
 0x212   :  { %v1209_v12 = vsel %vm1208_vm14, %v1207_v1, %v1113_v16  ;;  %v1160_v15 = vcvt.s32.f32 %v1158_v29  ;;  %v1188_v57 = vcvt.s32.f32 %v1186_v34  ;;  %v3915_v16 = vld [vmem:[#allocation6_spill] sm:$0xff] }
 0x213   :  { %1190 = vmin.xlane.f32.xlu0 %v1189_v48  ;;  %vm1210_vm15 = vcmp.lt.s32.totalorder %v1209_v12, %v1114_v21  ;;  %v3922_v1 = vld [vmem:[#allocation14_spill] sm:$0xff] }
 0x214   :  { %v1211_v32 = vsel %vm1210_vm15, %v1209_v12, %v1114_v21  ;;  %v3923_v21 = vld [vmem:[#allocation15_spill] sm:$0xff] }
 0x215   :  { %vm1212_vm1 = vcmp.lt.s32.totalorder %v1211_v32, %v1115_v3 }
 0x216   :  { %v1213_v4 = vsel %vm1212_vm1, %v1211_v32, %v1115_v3 }
 0x217   :  { %v1215_v42 = vshra.s32 %v1213_v4, 16  ;;  %v1214_v27 = vand.u32 65535, %v1213_v4 }
 0x219   :  { %v1217_v28 = vcvt.s32.f32 %v1215_v42  ;;  %v1216_v30 = vcvt.s32.f32 %v1214_v27 }
 0x21b   :  { %1218 = vmin.xlane.f32.xlu1 %v1217_v28 }
 0x293   :  { %v1135_v44 = vpop.xlane.xlu0 %1134 }
 0x294   :  { %vm1136_vm2 = vcmp.eq.f32.partialorder %v3674_v5, %v1135_v44  ;;  %v1141_v5 = vcvt.f32.s32 %v1135_v44 }
 0x295   :  { %v1137_v53 = vsel %vm1136_vm2, %v1132_v59, inf }
 0x296   :  { %1138 = vmin.xlane.f32.xlu0 %v1137_v53  ;;  %v1142_v58 = vshll.u32 %v1141_v5, 16 }
 0x298   :  { %v1163_v50 = vpop.xlane.xlu1 %1162 }
 0x299   :  { %vm1164_vm3 = vcmp.eq.f32.partialorder %v1161_v13, %v1163_v50  ;;  %v1169_v40 = vcvt.f32.s32 %v1163_v50 }
 0x29a   :  { %v1165_v25 = vsel %vm1164_vm3, %v1160_v15, inf }
 0x29b   :  { %1166 = vmin.xlane.f32.xlu1 %v1165_v25  ;;  %v1170_v55 = vshll.u32 %v1169_v40, 16 }
 0x2a0   :  { %v1191_v20 = vpop.xlane.xlu0 %1190 }
 0x2a1   :  { %vm1192_vm4 = vcmp.eq.f32.partialorder %v1189_v48, %v1191_v20  ;;  %v1197_v62 = vcvt.f32.s32 %v1191_v20  ;;  %v3914_v48 = vld [vmem:[#allocation7_spill] sm:$0xff] }
 0x2a2   :  { %v1193_v38 = vsel %vm1192_vm4, %v1188_v57, inf }
 0x2a3   :  { %1194 = vmin.xlane.f32.xlu0 %v1193_v38 }
 0x2a8   :  { %v1219_v19 = vpop.xlane.xlu1 %1218 }
 0x2a9   :  { %vm1220_vm5 = vcmp.eq.f32.partialorder %v1217_v28, %v1219_v19 }
 0x2aa   :  { %v1221_v41 = vsel %vm1220_vm5, %v1216_v30, inf }
 0x2ab   :  { %1222 = vmin.xlane.f32.xlu1 %v1221_v41 }
 0x323   :  { %v1139_v45 = vpop.xlane.xlu0 %1138 }
 0x324   :  { %v1140_v36 = vcvt.f32.s32 %v1139_v45 }
 0x326   :  { %v3714_v13 = vadd.s32 %v1142_v58, %v1140_v36 }
 0x328   :  { %v1167_v22 = vpop.xlane.xlu1 %1166  ;;  %vm1229_vm6 = vcmp.eq.s32.totalorder %v3591_v39, %v3714_v13  ;;  %vm1231_vm7 = vcmp.eq.s32.totalorder %v3599_v35, %v3714_v13  ;;  %vm1228_vm8 = vcmp.eq.s32.totalorder %v3588_v7, %v3714_v13  ;;  %vm1230_vm9 = vcmp.eq.s32.totalorder %v3596_v51, %v3714_v13 }
 0x329   :  { %v1168_v61 = vcvt.f32.s32 %v1167_v22  ;;  %1905 = vmatprep.mubr.msk.f32.mxu0 %vm1229_vm6, %v2600_v63  ;;  %1913 = vmatprep.mubr.msk.f32.mxu1 %vm1231_vm7, %v2600_v63  ;;  %vm1233_vm7 = vcmp.eq.s32.totalorder %v3605_v54, %v3714_v13 }
 0x32a   :  { %1906 = vmatmul.mubr.msk.f32.vlgmr.msra.gmra.mrb[16].mxu0 %vm1228_vm8, %v2600_v63  ;;  %1914 = vmatmul.mubr.msk.f32.vlgmr.msra.gmra.mrb[16].mxu1 %vm1230_vm9, %v2600_v63  ;;  %vm1235_vm8 = vcmp.eq.s32.totalorder %v3614_v11, %v3714_v13  ;;  %vm1232_vm9 = vcmp.eq.s32.totalorder %v3602_v2, %v3714_v13 }
 0x32b   :  { %v3728_v17 = vadd.s32 %v1170_v55, %v1168_v61  ;;  %2532 = vmatpush3.bf16.msra.mxu0 %v3033_v9  ;;  %2564 = vmatpush3.bf16.msra.mxu1 %v3048_v18 }
 0x32c   :  { %2534 = vmatprep.subr.bf16.mxu0 %v3041_v14  ;;  %2566 = vmatprep.subr.bf16.mxu1 %v3052_v23  ;;  %v1198_v14 = vshll.u32 %v1197_v62, 16 }
 0x32d   :  { %vm1237_vm10 = vcmp.eq.s32.totalorder %v3591_v39, %v3728_v17  ;;  %vm1239_vm11 = vcmp.eq.s32.totalorder %v3599_v35, %v3728_v17  ;;  %vm1236_vm12 = vcmp.eq.s32.totalorder %v3588_v7, %v3728_v17  ;;  %vm1238_vm13 = vcmp.eq.s32.totalorder %v3596_v51, %v3728_v17 }
 0x32e   :  { %1907 = vmatprep.mubr.msk.f32.mxu0 %vm1237_vm10, %v2600_v63  ;;  %1915 = vmatprep.mubr.msk.f32.mxu1 %vm1239_vm11, %v2600_v63  ;;  %vm1234_vm10 = vcmp.eq.s32.totalorder %v3611_v33, %v3714_v13  ;;  %vm1241_vm11 = vcmp.eq.s32.totalorder %v3605_v54, %v3728_v17 }
 0x32f   :  { %1908 = vmatmul.mubr.msk.f32.gmra.mrb[18].mxu0 %vm1236_vm12, %v2600_v63  ;;  %1916 = vmatmul.mubr.msk.f32.gmra.mrb[18].mxu1 %vm1238_vm13, %v2600_v63  ;;  %vm1243_vm12 = vcmp.eq.s32.totalorder %v3614_v11, %v3728_v17  ;;  %vm1240_vm13 = vcmp.eq.s32.totalorder %v3602_v2, %v3728_v17 }
 0x330   :  { %v1195_v9 = vpop.xlane.xlu0 %1194  ;;  %2536 = vmatpush3.bf16.msra.mxu0 %v3097_v43  ;;  %2568 = vmatpush3.bf16.msra.mxu1 %v3116_v49  ;;  %v1225_v43 = vcvt.f32.s32 %v1219_v19  ;;  %v3910_v49 = vld [vmem:[#allocation3_spill] sm:$0xff] }
 0x331   :  { %v1196_v18 = vcvt.f32.s32 %v1195_v9  ;;  %2538 = vmatprep.subr.bf16.mxu0 %v3107_v47  ;;  %2570 = vmatprep.subr.bf16.mxu1 %v3120_v52  ;;  %v3911_v52 = vld [vmem:[#allocation2_spill] sm:$0xff] }
 0x333   :  { %v3750_v23 = vadd.s32 %v1198_v14, %v1196_v18  ;;  %v2596_v14 = vld [vmem:[%s3874_s0] sm:$0xff] }
 0x334   :  { %2540 = vmatpush3.bf16.msra.mxu0 %v3162_v8  ;;  %2572 = vmatpush3.bf16.msra.mxu1 %v3176_v26  ;;  %v1226_v8 = vshll.u32 %v1225_v43, 16  ;;  %v3912_v26 = vld [vmem:[#allocation4_spill] sm:$0xff] }
 0x335   :  { %vm1245_vm14 = vcmp.eq.s32.totalorder %v3591_v39, %v3750_v23  ;;  %vm1247_vm15 = vcmp.eq.s32.totalorder %v3599_v35, %v3750_v23  ;;  %vm1244_vm1 = vcmp.eq.s32.totalorder %v3588_v7, %v3750_v23  ;;  %vm1246_vm2 = vcmp.eq.s32.totalorder %v3596_v51, %v3750_v23  ;;  %2542 = vmatprep.subr.bf16.mxu0 %v3172_v24 }
 0x336   :  { %1909 = vmatprep.mubr.msk.f32.mxu0 %vm1245_vm14, %v2600_v63  ;;  %1917 = vmatprep.mubr.msk.f32.mxu1 %vm1247_vm15, %v2600_v63  ;;  %vm1242_vm14 = vcmp.eq.s32.totalorder %v3611_v33, %v3728_v17  ;;  %vm1249_vm15 = vcmp.eq.s32.totalorder %v3605_v54, %v3750_v23 }
 0x337   :  { %1910 = vmatmul.mubr.msk.f32.gmra.mrb[20].mxu0 %vm1244_vm1, %v2600_v63  ;;  %1918 = vmatmul.mubr.msk.f32.gmra.mrb[20].mxu1 %vm1246_vm2, %v2600_v63  ;;  %vm1251_vm1 = vcmp.eq.s32.totalorder %v3614_v11, %v3750_v23  ;;  %vm1248_vm2 = vcmp.eq.s32.totalorder %v3602_v2, %v3750_v23 }
 0x338   :  { %2574 = vmatprep.subr.bf16.mxu1 %v3180_v31  ;;  %2544 = vmatpush3.bf16.msra.mxu0 %v3212_v60  ;;  %v1223_v47 = vpop.xlane.xlu1 %1222  ;;  %v3916_v31 = vld [vmem:[#allocation8_spill] sm:$0xff]  ;;  %v3917_v60 = vld [vmem:[#allocation9_spill] sm:$0xff] }
 0x339   :  { %2576 = vmatpush3.bf16.msra.mxu1 %v3910_v49  ;;  %2546 = vmatprep.subr.bf16.mxu0 %v3911_v52  ;;  %v1224_v24 = vcvt.f32.s32 %v1223_v47 }
 0x33a   :  { %2578 = vmatprep.subr.bf16.mxu1 %v3912_v26 }
 0x33b   :  { %v1227_v10 = vadd.s32 %v1226_v8, %v1224_v24 }
 0x33c   :  { %2548 = vmatpush3.bf16.msra.mxu0 %v3913_v0  ;;  %v2597_v0 = vld [vmem:[%s3874_s0 + $0x8] sm:$0xff] }
 0x33d   :  { %2580 = vmatpush3.bf16.msra.mxu1 %v3914_v48  ;;  %2550 = vmatprep.subr.bf16.mxu0 %v3915_v16  ;;  %vm1253_vm3 = vcmp.eq.s32.totalorder %v3591_v39, %v1227_v10  ;;  %vm1255_vm4 = vcmp.eq.s32.totalorder %v3599_v35, %v1227_v10  ;;  %vm1252_vm5 = vcmp.eq.s32.totalorder %v3588_v7, %v1227_v10  ;;  %v3918_v7 = vld [vmem:[#allocation11_spill] sm:$0xff]  ;;  %v3919_v39 = vld [vmem:[#allocation10_spill] sm:$0xff]  ;;  %v3921_v35 = vld [vmem:[#allocation13_spill] sm:$0xff] }
 0x33e   :  { %vm1254_vm6 = vcmp.eq.s32.totalorder %v3596_v51, %v1227_v10  ;;  %2582 = vmatprep.subr.bf16.mxu1 %v3916_v31  ;;  %1911 = vmatprep.mubr.msk.f32.mxu0 %vm1253_vm3, %v2600_v63  ;;  %v3920_v51 = vld [vmem:[#allocation12_spill] sm:$0xff]  ;;  %vm1250_vm3 = vcmp.eq.s32.totalorder %v3611_v33, %v3750_v23 }
 0x33f   :  { %1919 = vmatprep.mubr.msk.f32.mxu1 %vm1255_vm4, %v2600_v63  ;;  %1912 = vmatmul.mubr.msk.f32.gmra.mrb[22].mxu0 %vm1252_vm5, %v2600_v63  ;;  %vm1257_vm4 = vcmp.eq.s32.totalorder %v3605_v54, %v1227_v10  ;;  %vm1259_vm5 = vcmp.eq.s32.totalorder %v3614_v11, %v1227_v10 }
 0x340   :  { %1920 = vmatmul.mubr.msk.f32.gmra.mrb[22].mxu1 %vm1254_vm6, %v2600_v63  ;;  %1921 = vmatprep.mubr.msk.f32.mxu0 %vm1233_vm7, %v2600_v63  ;;  %vm1256_vm6 = vcmp.eq.s32.totalorder %v3602_v2, %v1227_v10  ;;  %vm1258_vm7 = vcmp.eq.s32.totalorder %v3611_v33, %v1227_v10 }
 0x341   :  { %1929 = vmatprep.mubr.msk.f32.mxu1 %vm1235_vm8, %v2600_v63  ;;  %2552 = vmatpush3.bf16.msra.mxu0 %v3917_v60 }
 0x342   :  { %2584 = vmatpush3.bf16.msra.mxu1 %v3918_v7  ;;  %2554 = vmatprep.subr.bf16.mxu0 %v3919_v39 }
 0x343   :  { %2586 = vmatprep.subr.bf16.mxu1 %v3920_v51 }
 0x345   :  { %2556 = vmatpush3.bf16.msra.mxu0 %v3344_v46 }
 0x346   :  { %2588 = vmatpush3.bf16.msra.mxu1 %v3354_v56  ;;  %2558 = vmatprep.subr.bf16.mxu0 %v3352_v6 }
 0x347   :  { %2590 = vmatprep.subr.bf16.mxu1 %v3921_v35 }
 0x349   :  { %2560 = vmatpush3.bf16.msra.mxu0 %v3922_v1 }
 0x34a   :  { %2592 = vmatpush3.bf16.msra.mxu1 %v3923_v21 }
 0x34c   :  { %1922 = vmatmul.mubr.msk.f32.vlgmr.msra.gmra.mrb[24].mxu0 %vm1232_vm9, %v2600_v63 }
 0x34d   :  { %1930 = vmatmul.mubr.msk.f32.vlgmr.msra.gmra.mrb[24].mxu1 %vm1234_vm10, %v2600_v63  ;;  %1923 = vmatprep.mubr.msk.f32.mxu0 %vm1241_vm11, %v2600_v63 }
 0x34e   :  { %1931 = vmatprep.mubr.msk.f32.mxu1 %vm1243_vm12, %v2600_v63 }
 0x350   :  { %1924 = vmatmul.mubr.msk.f32.gmra.mrb[26].mxu0 %vm1240_vm13, %v2600_v63 }
 0x351   :  { %1932 = vmatmul.mubr.msk.f32.gmra.mrb[26].mxu1 %vm1242_vm14, %v2600_v63  ;;  %1925 = vmatprep.mubr.msk.f32.mxu0 %vm1249_vm15, %v2600_v63 }
 0x352   :  { %1933 = vmatprep.mubr.msk.f32.mxu1 %vm1251_vm1, %v2600_v63 }
 0x354   :  { %1926 = vmatmul.mubr.msk.f32.gmra.mrb[28].mxu0 %vm1248_vm2, %v2600_v63 }
 0x355   :  { %1934 = vmatmul.mubr.msk.f32.gmra.mrb[28].mxu1 %vm1250_vm3, %v2600_v63  ;;  %1927 = vmatprep.mubr.msk.f32.mxu0 %vm1257_vm4, %v2600_v63 }
 0x356   :  { %1935 = vmatprep.mubr.msk.f32.mxu1 %vm1259_vm5, %v2600_v63 }
 0x358   :  { %1928 = vmatmul.mubr.msk.f32.gmra.mrb[30].mxu0 %vm1256_vm6, %v2600_v63 }
 0x359   :  { %1936 = vmatmul.mubr.msk.f32.gmra.mrb[30].mxu1 %vm1258_vm7, %v2600_v63 }
 0x3fd   :  { %v2129_v6 = vpop.f32.mrb[16].mxu0  ;;  %v2173_v56 = vpop.f32.mrb[16].mxu1 }
 0x3fe   :  { %v2130_v46 = vpop.f32.mrb[17].mxu0  ;;  %v2174_v12 = vpop.f32.mrb[17].mxu1 }
 0x3ff   :  { %v2131_v3 = vadd.f32 %v2130_v46, %v2129_v6  ;;  %v2175_v54 = vadd.f32 %v2174_v12, %v2173_v56  ;;  %v2598_v6 = vld [vmem:[%s3874_s0 + $0x10] sm:$0xff] }
 0x401   :  { %v1476_v32 = vadd.f32 %v2175_v54, %v2131_v3 }
 0x402   :  { %v2132_v11 = vpop.f32.mrb[18].mxu0  ;;  %v2176_v4 = vpop.f32.mrb[18].mxu1 }
 0x403   :  { %v2133_v42 = vpop.f32.mrb[19].mxu0  ;;  %v2177_v28 = vpop.f32.mrb[19].mxu1 }
 0x404   :  { %v2134_v37 = vadd.f32 %v2133_v42, %v2132_v11  ;;  %v2178_v44 = vadd.f32 %v2177_v28, %v2176_v4  ;;  %v2599_v4 = vld [vmem:[%s3874_s0 + $0x18] sm:$0xff] }
 0x406   :  { %v1481_v2 = vadd.f32 %v2178_v44, %v2134_v37 }
 0x40a   :  { %v2135_v59 = vpop.f32.mrb[20].mxu0  ;;  %v2179_v33 = vpop.f32.mrb[20].mxu1 }
 0x40b   :  { %v2136_v29 = vpop.f32.mrb[21].mxu0  ;;  %v2180_v53 = vpop.f32.mrb[21].mxu1 }
 0x40c   :  { %v2137_v50 = vadd.f32 %v2136_v29, %v2135_v59  ;;  %v2181_v15 = vadd.f32 %v2180_v53, %v2179_v33 }
 0x40e   :  { %v1486_v25 = vadd.f32 %v2181_v15, %v2137_v50 }
 0x412   :  { %v2138_v34 = vpop.f32.mrb[22].mxu0 }
 0x413   :  { %v2182_v20 = vpop.f32.mrb[22].mxu1  ;;  %v2139_v57 = vpop.f32.mrb[23].mxu0 }
 0x414   :  { %v2183_v38 = vpop.f32.mrb[23].mxu1  ;;  %v2140_v27 = vadd.f32 %v2139_v57, %v2138_v34 }
 0x415   :  { %v2184_v19 = vadd.f32 %v2183_v38, %v2182_v20 }
 0x417   :  { %v1491_v30 = vadd.f32 %v2184_v19, %v2140_v27 }
 0x41f   :  { %v2217_v41 = vpop.f32.mrb[24].mxu0 }
 0x420   :  { %v2261_v5 = vpop.f32.mrb[24].mxu1  ;;  %v2218_v45 = vpop.f32.mrb[25].mxu0 }
 0x421   :  { %v2262_v58 = vpop.f32.mrb[25].mxu1  ;;  %v2219_v36 = vadd.f32 %v2218_v45, %v2217_v41 }
 0x422   :  { %v2263_v40 = vadd.f32 %v2262_v58, %v2261_v5 }
 0x423   :  { %v1561_v13 = vadd.f32 %v2219_v36, %v1476_v32  ;;  %v2220_v22 = vpop.f32.mrb[26].mxu0 }
 0x424   :  { %v2264_v55 = vpop.f32.mrb[26].mxu1  ;;  %v2221_v61 = vpop.f32.mrb[27].mxu0 }
 0x425   :  { %v2265_v63 = vpop.f32.mrb[27].mxu1  ;;  %v1646_v17 = vadd.f32 %v2263_v40, %v1561_v13  ;;  %v2222_v62 = vadd.f32 %v2221_v61, %v2220_v22 }
 0x426   :  { %v2266_v9 = vadd.f32 %v2265_v63, %v2264_v55 }
 0x427   :  { %1664 = vst.msk [vmem:[%s3876_s3] sm:$0xff] %vm149_vm0, %v1646_v17  ;;  %v1683_v18 = vsub.f32 %v1646_v17, %v2596_v14  ;;  %v1566_v23 = vadd.f32 %v2222_v62, %v1481_v2  ;;  %v2223_v43 = vpop.f32.mrb[28].mxu0 }
 0x428   :  { %v2267_v47 = vpop.f32.mrb[28].mxu1  ;;  %v2224_v49 = vpop.f32.mrb[29].mxu0 }
 0x429   :  { %v2268_v52 = vpop.f32.mrb[29].mxu1  ;;  %v1651_v8 = vadd.f32 %v2266_v9, %v1566_v23  ;;  %v2225_v24 = vadd.f32 %v2224_v49, %v2223_v43  ;;  %v1699_v10 = vmul.f32 %v1683_v18, %v1683_v18 }
 0x42a   :  { %v2269_v26 = vadd.f32 %v2268_v52, %v2267_v47 }
 0x42b   :  { %1665 = vst.msk [vmem:[%s3876_s3 + $0x8] sm:$0xff] %vm149_vm0, %v1651_v8  ;;  %v1684_v48 = vsub.f32 %v1651_v8, %v2597_v0  ;;  %v1571_v16 = vadd.f32 %v2225_v24, %v1486_v25  ;;  %v2226_v31 = vpop.f32.mrb[30].mxu0  ;;  %v1703_v12 = vsel %vm149_vm0, %v1699_v10, 0.0 }
 0x42c   :  { %v2270_v60 = vpop.f32.mrb[30].mxu1  ;;  %v2227_v7 = vpop.f32.mrb[31].mxu0 }
 0x42d   :  { %v2271_v39 = vpop.f32.mrb[31].mxu1  ;;  %v1700_v51 = vmul.f32 %v1684_v48, %v1684_v48  ;;  %v1656_v35 = vadd.f32 %v2269_v26, %v1571_v16  ;;  %v2228_v1 = vadd.f32 %v2227_v7, %v2226_v31 }
 0x42e   :  { %v2272_v21 = vadd.f32 %v2271_v39, %v2270_v60 }
 0x42f   :  { %1666 = vst.msk [vmem:[%s3876_s3 + $0x10] sm:$0xff] %vm149_vm0, %v1656_v35  ;;  %v1685_v56 = vsub.f32 %v1656_v35, %v2598_v6  ;;  %v1576_v46 = vadd.f32 %v2228_v1, %v1491_v30  ;;  %v1704_v3 = vsel %vm149_vm0, %v1700_v51, 0.0 }
 0x430   :  { %v1705_v54 = vadd.f32 %v1704_v3, %v1703_v12 }
 0x431   :  { %v1701_v32 = vmul.f32 %v1685_v56, %v1685_v56  ;;  %v1661_v11 = vadd.f32 %v2272_v21, %v1576_v46 }
 0x433   :  { %1667 = vst.msk [vmem:[%s3876_s3 + $0x18] sm:$0xff] %vm149_vm0, %v1661_v11  ;;  %v1686_v42 = vsub.f32 %v1661_v11, %v2599_v4  ;;  %v1706_v28 = vsel %vm149_vm0, %v1701_v32, 0.0 }
 0x434   :  { %v1707_v37 = vadd.f32 %v1706_v28, %v1705_v54 }
 0x435   :  { %v1702_v44 = vmul.f32 %v1686_v42, %v1686_v42 }
 0x437   :  { %v1708_v2 = vsel %vm149_vm0, %v1702_v44, 0.0 }
 0x438   :  { %v1709_v59 = vadd.f32 %v1708_v2, %v1707_v37 }
 0x43a   :  { %1710 = vadd.xlane.f32.xlu0 %v1709_v59 }
 0x4c7   :  { %v1711_v33 = vpop.xlane.xlu0 %1710 }
 0x4c8   :  { %v1712_v29 = vrot.slane %v1711_v33, 4 }
 0x4ca   :  { %v1713_v53 = vadd.f32 %v1712_v29, %v1711_v33 }
 0x4cc   :  { %v1714_v50 = vrot.slane %v1713_v53, 2 }
 0x4ce   :  { %v1715_v15 = vadd.f32 %v1714_v50, %v1713_v53 }
 0x4d0   :  { %v1716_v25 = vrot.slane %v1715_v15, 1 }
 0x4d2   :  { %v1717_v34 = vadd.f32 %v1716_v25, %v1715_v15 }
 0x4d4   :  { %2593 = vpush %v1717_v34 }
 0x505   :  { %s2594_s3 = spop %2593 }
 0x506   :  { %v1719_v20 = vstv %s2594_s3 }
 0x507   :  { %1720 = vst [vmem:[%s3877_s4] sm:$0xff] %v1719_v20 }

// kernel: vqvae_forward.8
= control target key start
LH: loop header
LB: loop body
LE: loop exit
PB: predicated region body
PF: predicated region fallthrough
CT: control target
= control target key end

     0   :  { %vm110_vm0 = vcmask 523264   ;;  %s460_s1 = inlined_call_operand.vmem [shape: bf16[64,128], index: 1, kind: input, shape index: {}]   ;;  %s461_s0 = inlined_call_operand.vmem [shape: bf16[128,64], index: 0, kind: input, shape index: {}]   ;;  %s462_s2 = inlined_call_operand.vmem [shape: f32[1,128], index: 2, kind: input, shape index: {}]   ;;  %s463_s3 = inlined_call_operand.vmem [shape: f32[128,128], index: 3, kind: output, shape index: {}]  }
   0x1   :  { %v333_v0 = vld [vmem:[%s460_s1] sm:$0xff]   ;;  %v334_v1 = vld [vmem:[%s460_s1 + $0x8] sm:$0xff]   ;;  %v335_v2 = vld [vmem:[%s460_s1 + $0x10] sm:$0xff]  }
   0x2   :  { %301 = vmatprep.subr.bf16.mxu0 %v333_v0  ;;  %325 = vmatprep.subr.bf16.mxu1 %v333_v0  ;;  %v337_v3 = vld [vmem:[%s461_s0] sm:$0xff]   ;;  %v336_v5 = vld [vmem:[%s460_s1 + $0x18] sm:$0xff]   ;;  %v339_v6 = vld [vmem:[%s461_s0 + $0x8] sm:$0xff]  }
   0x3   :  { %302 = vmatpush3.bf16.msra.mxu0 %v333_v0  ;;  %329 = vmatpush3.bf16.msra.mxu1 %v333_v0  ;;  %v338_v4 = vld [vmem:[%s461_s0 + $0x20] sm:$0xff]   ;;  %v340_v7 = vld [vmem:[%s461_s0 + $0x28] sm:$0xff]   ;;  %v341_v8 = vld [vmem:[%s461_s0 + $0x10] sm:$0xff]  }
   0x4   :  { %303 = vmatprep.subr.bf16.mxu0 %v334_v1  ;;  %326 = vmatprep.subr.bf16.mxu1 %v334_v1  ;;  %v342_v9 = vld [vmem:[%s461_s0 + $0x30] sm:$0xff]   ;;  %v343_v10 = vld [vmem:[%s461_s0 + $0x18] sm:$0xff]   ;;  %v268_v12 = vld [vmem:[%s462_s2] ss:$0 sm:$0xff] }
   0x5   :  { %309 = vmatprep.mubr.msk.bf16.mxu0 %vm110_vm0, %v337_v3  ;;  %317 = vmatprep.mubr.msk.bf16.mxu1 %vm110_vm0, %v338_v4  ;;  %v344_v11 = vld [vmem:[%s461_s0 + $0x38] sm:$0xff]  }
   0x7   :  { %304 = vmatpush3.bf16.msra.mxu0 %v334_v1  ;;  %330 = vmatpush3.bf16.msra.mxu1 %v334_v1 }
   0x8   :  { %305 = vmatprep.subr.bf16.mxu0 %v335_v2  ;;  %327 = vmatprep.subr.bf16.mxu1 %v335_v2 }
   0xb   :  { %306 = vmatpush3.bf16.msra.mxu0 %v335_v2  ;;  %331 = vmatpush3.bf16.msra.mxu1 %v335_v2 }
   0xc   :  { %307 = vmatprep.subr.bf16.mxu0 %v336_v5  ;;  %328 = vmatprep.subr.bf16.mxu1 %v336_v5 }
   0xf   :  { %308 = vmatpush3.bf16.msra.mxu0 %v336_v5  ;;  %332 = vmatpush3.bf16.msra.mxu1 %v336_v5 }
  0x12   :  { %310 = vmatmul.mubr.msk.bf16.vlgmr.msra.gmra.mrb[0].mxu0 %vm110_vm0, %v339_v6  ;;  %318 = vmatmul.mubr.msk.bf16.vlgmr.msra.gmra.mrb[0].mxu1 %vm110_vm0, %v340_v7 }
  0x13   :  { %313 = vmatprep.mubr.msk.bf16.mxu0 %vm110_vm0, %v341_v8  ;;  %321 = vmatprep.mubr.msk.bf16.mxu1 %vm110_vm0, %v342_v9 }
  0x1a   :  { %314 = vmatmul.mubr.msk.bf16.gmra.mrb[4].mxu0 %vm110_vm0, %v343_v10  ;;  %322 = vmatmul.mubr.msk.bf16.gmra.mrb[4].mxu1 %vm110_vm0, %v344_v11 }
  0xe5   :  { %v311_v13 = vpop.f32.mrb[0].mxu0  ;;  %v319_v14 = vpop.f32.mrb[0].mxu1 }
  0xe6   :  { %v178_v15 = vadd.f32 %v311_v13, %v268_v12  ;;  %v210_v16 = vadd.f32 %v319_v14, %v268_v12  ;;  %v169_v17 = vpop.f32.mrb[1].mxu0  ;;  %v201_v18 = vpop.f32.mrb[1].mxu1 }
  0xe7   :  { %v170_v19 = vadd.f32 %v268_v12, %v169_v17  ;;  %v202_v20 = vadd.f32 %v268_v12, %v201_v18  ;;  %v312_v21 = vpop.f32.mrb[2].mxu0  ;;  %v320_v22 = vpop.f32.mrb[2].mxu1 }
  0xe8   :  { %v234_v23 = vmax.f32 %v178_v15, 0.0  ;;  %v242_v24 = vmax.f32 %v210_v16, 0.0  ;;  %v181_v25 = vadd.f32 %v312_v21, %v268_v12  ;;  %v213_v26 = vadd.f32 %v320_v22, %v268_v12  ;;  %v172_v27 = vpop.f32.mrb[3].mxu0  ;;  %v204_v28 = vpop.f32.mrb[3].mxu1 }
  0xe9   :  { %v232_v29 = vmax.f32 %v170_v19, 0.0  ;;  %v240_v30 = vmax.f32 %v202_v20, 0.0  ;;  %v173_v31 = vadd.f32 %v268_v12, %v172_v27  ;;  %v205_v32 = vadd.f32 %v268_v12, %v204_v28 }
  0xea   :  { %250 = vst [vmem:[%s463_s3 + $0x10] sm:$0xff] %v234_v23  ;;  %258 = vst [vmem:[%s463_s3 + $0x50] sm:$0xff] %v242_v24  ;;  %v235_v33 = vmax.f32 %v181_v25, 0.0  ;;  %v243_v34 = vmax.f32 %v213_v26, 0.0 }
  0xeb   :  { %248 = vst [vmem:[%s463_s3] sm:$0xff] %v232_v29  ;;  %256 = vst [vmem:[%s463_s3 + $0x40] sm:$0xff] %v240_v30  ;;  %v233_v35 = vmax.f32 %v173_v31, 0.0  ;;  %v241_v36 = vmax.f32 %v205_v32, 0.0 }
  0xec   :  { %251 = vst [vmem:[%s463_s3 + $0x18] sm:$0xff] %v235_v33  ;;  %259 = vst [vmem:[%s463_s3 + $0x58] sm:$0xff] %v243_v34 }
  0xed   :  { %249 = vst [vmem:[%s463_s3 + $0x8] sm:$0xff] %v233_v35  ;;  %257 = vst [vmem:[%s463_s3 + $0x48] sm:$0xff] %v241_v36  ;;  %v315_v37 = vpop.f32.mrb[4].mxu0  ;;  %v323_v38 = vpop.f32.mrb[4].mxu1 }
  0xee   :  { %v194_v39 = vadd.f32 %v315_v37, %v268_v12  ;;  %v226_v40 = vadd.f32 %v323_v38, %v268_v12  ;;  %v185_v41 = vpop.f32.mrb[5].mxu0  ;;  %v217_v42 = vpop.f32.mrb[5].mxu1 }
  0xef   :  { %v186_v43 = vadd.f32 %v268_v12, %v185_v41  ;;  %v218_v44 = vadd.f32 %v268_v12, %v217_v42  ;;  %v316_v45 = vpop.f32.mrb[6].mxu0  ;;  %v324_v46 = vpop.f32.mrb[6].mxu1 }
  0xf0   :  { %v238_v47 = vmax.f32 %v194_v39, 0.0  ;;  %v246_v48 = vmax.f32 %v226_v40, 0.0  ;;  %v197_v49 = vadd.f32 %v316_v45, %v268_v12  ;;  %v229_v50 = vadd.f32 %v324_v46, %v268_v12  ;;  %v188_v51 = vpop.f32.mrb[7].mxu0  ;;  %v220_v52 = vpop.f32.mrb[7].mxu1 }
  0xf1   :  { %v236_v53 = vmax.f32 %v186_v43, 0.0  ;;  %v244_v54 = vmax.f32 %v218_v44, 0.0  ;;  %v189_v55 = vadd.f32 %v268_v12, %v188_v51  ;;  %v221_v56 = vadd.f32 %v268_v12, %v220_v52 }
  0xf2   :  { %254 = vst [vmem:[%s463_s3 + $0x30] sm:$0xff] %v238_v47  ;;  %262 = vst [vmem:[%s463_s3 + $0x70] sm:$0xff] %v246_v48  ;;  %v239_v57 = vmax.f32 %v197_v49, 0.0  ;;  %v247_v58 = vmax.f32 %v229_v50, 0.0 }
  0xf3   :  { %252 = vst [vmem:[%s463_s3 + $0x20] sm:$0xff] %v236_v53  ;;  %260 = vst [vmem:[%s463_s3 + $0x60] sm:$0xff] %v244_v54  ;;  %v237_v59 = vmax.f32 %v189_v55, 0.0  ;;  %v245_v60 = vmax.f32 %v221_v56, 0.0 }
  0xf4   :  { %255 = vst [vmem:[%s463_s3 + $0x38] sm:$0xff] %v239_v57  ;;  %263 = vst [vmem:[%s463_s3 + $0x78] sm:$0xff] %v247_v58 }
  0xf5   :  { %253 = vst [vmem:[%s463_s3 + $0x28] sm:$0xff] %v237_v59  ;;  %261 = vst [vmem:[%s463_s3 + $0x68] sm:$0xff] %v245_v60 }

// kernel: vqvae_forward.9
= control target key start
LH: loop header
LB: loop body
LE: loop exit
PB: predicated region body
PF: predicated region fallthrough
CT: control target
= control target key end

     0   :  { %s1044_s12 = smov 0   ;;  %s1221_s0 = inlined_call_operand.vmem [shape: bf16[512,256], index: 0, kind: input, shape index: {}]   ;;  %s1222_s1 = inlined_call_operand.vmem [shape: bf16[256,128], index: 1, kind: input, shape index: {}]   ;;  %s1223_s2 = inlined_call_operand.vmem [shape: f32[1,128], index: 2, kind: input, shape index: {}]   ;;  %s1224_s3 = inlined_call_operand.vmem [shape: f32[512,128], index: 3, kind: output, shape index: {}]  }
   0x1 LB: > { %s754_s13 = sadd.s32 4294967295, %s1022_s12   ;;  %p758_p0 = scmp.ge.s32.totalorder %s1022_s12, 1  ;;  %s1022_s12 = sphi %s1044_s12, %s13_s12  }
   0x2   : > { %p139_p1 = scmp.lt.s32.totalorder %s1022_s12, 3 }
   0x4   : > { %p140_p2 = pnand %p758_p0, %p139_p1 }
   0x5   : > { %v952_v0 = vld [vmem:[%s1222_s1 + $0x40] sm:$0xff] (!%p140_p2)   ;;  %s759_s16 = sshll.u32 (!%p140_p2), %s754_s13, 5  ;;  %v954_v2 = vld [vmem:[%s1222_s1 + $0x48] sm:$0xff] (!%p140_p2)   ;;  %v956_v4 = vld [vmem:[%s1222_s1 + $0x50] sm:$0xff] (!%p140_p2)  }
   0x6   : > { %143 = sbr.rel (%p140_p2) target bundleno = 314 (0x13a), region = 32  ;;  %v953_v1 = vld [vmem:[%s1222_s1] sm:$0xff] (!%p140_p2)   ;;  %816 = vmatprep.subr.bf16.mxu0 (!%p140_p2), %v952_v0  ;;  %928 = vmatprep.subr.bf16.mxu1 (!%p140_p2), %v952_v0  ;;  %v955_v3 = vld [vmem:[%s1222_s1 + $0x8] sm:$0xff] (!%p140_p2)   ;;  %p165_p3 = scmp.lt.s32.totalorder (!%p140_p2), %s759_s16, 63  ;;  %v957_v5 = vld [vmem:[%s1222_s1 + $0x10] sm:$0xff] (!%p140_p2)  }
   0x7   : > { %817 = vmatpush3.bf16.msra.mxu0 (!%p140_p2), %v953_v1  ;;  %936 = vmatpush3.bf16.msra.mxu1 (!%p140_p2), %v953_v1  ;;  %v958_v6 = vld [vmem:[%s1222_s1 + $0x58] sm:$0xff] (!%p140_p2)   ;;  %v960_v8 = vld [vmem:[%s1222_s1 + $0x60] sm:$0xff] (!%p140_p2)   ;;  %v962_v10 = vld [vmem:[%s1222_s1 + $0x68] sm:$0xff] (!%p140_p2)  }
   0x8   : > { %818 = vmatprep.subr.bf16.mxu0 (!%p140_p2), %v954_v2  ;;  %929 = vmatprep.subr.bf16.mxu1 (!%p140_p2), %v954_v2  ;;  %v959_v7 = vld [vmem:[%s1222_s1 + $0x18] sm:$0xff] (!%p140_p2)   ;;  %v961_v9 = vld [vmem:[%s1222_s1 + $0x20] sm:$0xff] (!%p140_p2)   ;;  %v963_v13 = vld [vmem:[%s1222_s1 + $0x28] sm:$0xff] (!%p140_p2)  }
   0x9   : > { %v964_v14 = vld [vmem:[%s1222_s1 + $0x70] sm:$0xff] (!%p140_p2)   ;;  %v966_v16 = vld [vmem:[%s1222_s1 + $0x78] sm:$0xff] (!%p140_p2)   ;;  %v1145_v50 = vld [vmem:[%s1223_s2] ss:$0 sm:$0xff] (!%p140_p2) }
   0xa   : > { %v965_v15 = vld [vmem:[%s1222_s1 + $0x30] sm:$0xff] (!%p140_p2)   ;;  %v967_v17 = vld [vmem:[%s1222_s1 + $0x38] sm:$0xff] (!%p140_p2)  }
   0xb   : > { %819 = vmatpush3.bf16.msra.mxu0 (!%p140_p2), %v955_v3  ;;  %937 = vmatpush3.bf16.msra.mxu1 (!%p140_p2), %v955_v3 }
   0xc   : > { %820 = vmatprep.subr.bf16.mxu0 (!%p140_p2), %v956_v4  ;;  %930 = vmatprep.subr.bf16.mxu1 (!%p140_p2), %v956_v4 }
   0xd   : > { %s1226_s16 = smov (!%p165_p3, %s759_s16), 63 }
   0xe   : > { %s815_s4 = sshll.u32 %s1226_s16, 3 }
   0xf   : > { %821 = vmatpush3.bf16.msra.mxu0 %v957_v5  ;;  %938 = vmatpush3.bf16.msra.mxu1 %v957_v5  ;;  %s1087_s9 = scalar_lea.vmem %s1221_s0, %s815_s4  ;;  %s1152_s30 = scalar_lea.vmem %s1224_s3, %s815_s4 }
  0x10   : > { %822 = vmatprep.subr.bf16.mxu0 %v958_v6  ;;  %931 = vmatprep.subr.bf16.mxu1 %v958_v6  ;;  %v970_v11 = vld [vmem:[%s1087_s9 + $0x4] ss:$8 sps:$4 sm:$0xff]   ;;  %v968_v18 = vld [vmem:[%s1087_s9] ss:$8 sps:$4 sm:$0xff]   ;;  %v974_v20 = vld [vmem:[%s1087_s9 + $0x14] ss:$8 sps:$4 sm:$0xff]  }
  0x11   : > { %v973_v12 = vld [vmem:[%s1087_s9 + $0x84] ss:$8 sps:$4 sm:$0xff]   ;;  %537 = vmatprep.mubr.bf16.mxu0 %v970_v11  ;;  %v971_v19 = vld [vmem:[%s1087_s9 + $0x80] ss:$8 sps:$4 sm:$0xff]   ;;  %v976_v21 = vld [vmem:[%s1087_s9 + $0x94] ss:$8 sps:$4 sm:$0xff]  }
  0x12   : > { %601 = vmatprep.mubr.bf16.mxu1 %v973_v12  ;;  %v978_v22 = vld [vmem:[%s1087_s9 + $0x10] ss:$8 sps:$4 sm:$0xff]   ;;  %v980_v24 = vld [vmem:[%s1087_s9 + $0x24] ss:$8 sps:$4 sm:$0xff]   ;;  %v984_v26 = vld [vmem:[%s1087_s9 + $0x20] ss:$8 sps:$4 sm:$0xff]  }
  0x13   : > { %823 = vmatpush3.bf16.msra.mxu0 %v959_v7  ;;  %939 = vmatpush3.bf16.msra.mxu1 %v959_v7  ;;  %v979_v23 = vld [vmem:[%s1087_s9 + $0x90] ss:$8 sps:$4 sm:$0xff]   ;;  %v982_v25 = vld [vmem:[%s1087_s9 + $0xa4] ss:$8 sps:$4 sm:$0xff]   ;;  %v985_v27 = vld [vmem:[%s1087_s9 + $0xa0] ss:$8 sps:$4 sm:$0xff]  }
  0x14   : > { %824 = vmatprep.subr.bf16.mxu0 %v960_v8  ;;  %932 = vmatprep.subr.bf16.mxu1 %v960_v8  ;;  %v986_v28 = vld [vmem:[%s1087_s9 + $0x34] ss:$8 sps:$4 sm:$0xff]   ;;  %v990_v30 = vld [vmem:[%s1087_s9 + $0x30] ss:$8 sps:$4 sm:$0xff]   ;;  %v992_v32 = vld [vmem:[%s1087_s9 + $0x44] ss:$8 sps:$4 sm:$0xff]  }
  0x15   : > { %v988_v29 = vld [vmem:[%s1087_s9 + $0xb4] ss:$8 sps:$4 sm:$0xff]   ;;  %v991_v31 = vld [vmem:[%s1087_s9 + $0xb0] ss:$8 sps:$4 sm:$0xff]   ;;  %v994_v33 = vld [vmem:[%s1087_s9 + $0xc4] ss:$8 sps:$4 sm:$0xff]  }
  0x16   : > { %v996_v34 = vld [vmem:[%s1087_s9 + $0x40] ss:$8 sps:$4 sm:$0xff]   ;;  %v998_v36 = vld [vmem:[%s1087_s9 + $0x54] ss:$8 sps:$4 sm:$0xff]   ;;  %v1002_v38 = vld [vmem:[%s1087_s9 + $0x50] ss:$8 sps:$4 sm:$0xff]  }
  0x17   : > { %825 = vmatpush3.bf16.msra.mxu0 %v961_v9  ;;  %940 = vmatpush3.bf16.msra.mxu1 %v961_v9  ;;  %v997_v35 = vld [vmem:[%s1087_s9 + $0xc0] ss:$8 sps:$4 sm:$0xff]   ;;  %v1000_v37 = vld [vmem:[%s1087_s9 + $0xd4] ss:$8 sps:$4 sm:$0xff]   ;;  %v1003_v39 = vld [vmem:[%s1087_s9 + $0xd0] ss:$8 sps:$4 sm:$0xff]  }
  0x18   : > { %826 = vmatprep.subr.bf16.mxu0 %v962_v10  ;;  %933 = vmatprep.subr.bf16.mxu1 %v962_v10  ;;  %v1004_v40 = vld [vmem:[%s1087_s9 + $0x64] ss:$8 sps:$4 sm:$0xff]   ;;  %v1008_v42 = vld [vmem:[%s1087_s9 + $0x60] ss:$8 sps:$4 sm:$0xff]   ;;  %v1010_v44 = vld [vmem:[%s1087_s9 + $0x74] ss:$8 sps:$4 sm:$0xff]  }
  0x19   : > { %v1006_v41 = vld [vmem:[%s1087_s9 + $0xe4] ss:$8 sps:$4 sm:$0xff]   ;;  %v1009_v43 = vld [vmem:[%s1087_s9 + $0xe0] ss:$8 sps:$4 sm:$0xff]   ;;  %v1012_v45 = vld [vmem:[%s1087_s9 + $0xf4] ss:$8 sps:$4 sm:$0xff]  }
  0x1a   : > { %v1014_v46 = vld [vmem:[%s1087_s9 + $0x70] ss:$8 sps:$4 sm:$0xff]  }
  0x1b   : > { %827 = vmatpush3.bf16.msra.mxu0 %v963_v13  ;;  %941 = vmatpush3.bf16.msra.mxu1 %v963_v13  ;;  %v1015_v47 = vld [vmem:[%s1087_s9 + $0xf0] ss:$8 sps:$4 sm:$0xff]  }
  0x1c   : > { %828 = vmatprep.subr.bf16.mxu0 %v964_v14  ;;  %934 = vmatprep.subr.bf16.mxu1 %v964_v14 }
  0x1f   : > { %829 = vmatpush3.bf16.msra.mxu0 %v965_v15  ;;  %942 = vmatpush3.bf16.msra.mxu1 %v965_v15 }
  0x20   : > { %830 = vmatprep.subr.bf16.mxu0 %v966_v16  ;;  %935 = vmatprep.subr.bf16.mxu1 %v966_v16 }
  0x23   : > { %831 = vmatpush3.bf16.msra.mxu0 %v967_v17  ;;  %943 = vmatpush3.bf16.msra.mxu1 %v967_v17 }
  0x26   : > { %538 = vmatmul.mubr.bf16.vlgmr.msra.gmra.mrb[0].mxu0 %v968_v18  ;;  %602 = vmatmul.mubr.bf16.vlgmr.msra.gmra.mrb[0].mxu1 %v971_v19 }
  0x27   : > { %545 = vmatprep.mubr.bf16.mxu0 %v974_v20  ;;  %609 = vmatprep.mubr.bf16.mxu1 %v976_v21 }
  0x2e   : > { %546 = vmatmul.mubr.bf16.gmra.mrb[4].mxu0 %v978_v22  ;;  %610 = vmatmul.mubr.bf16.gmra.mrb[4].mxu1 %v979_v23 }
  0x2f   : > { %553 = vmatprep.mubr.bf16.mxu0 %v980_v24  ;;  %617 = vmatprep.mubr.bf16.mxu1 %v982_v25 }
  0x36   : > { %554 = vmatmul.mubr.bf16.gmra.mrb[8].mxu0 %v984_v26  ;;  %618 = vmatmul.mubr.bf16.gmra.mrb[8].mxu1 %v985_v27 }
  0x37   : > { %561 = vmatprep.mubr.bf16.mxu0 %v986_v28  ;;  %625 = vmatprep.mubr.bf16.mxu1 %v988_v29 }
  0x3e   : > { %562 = vmatmul.mubr.bf16.gmra.mrb[12].mxu0 %v990_v30  ;;  %626 = vmatmul.mubr.bf16.gmra.mrb[12].mxu1 %v991_v31 }
  0x3f   : > { %569 = vmatprep.mubr.bf16.mxu0 %v992_v32  ;;  %633 = vmatprep.mubr.bf16.mxu1 %v994_v33 }
  0x46   : > { %570 = vmatmul.mubr.bf16.gmra.mrb[16].mxu0 %v996_v34  ;;  %634 = vmatmul.mubr.bf16.gmra.mrb[16].mxu1 %v997_v35 }
  0x47   : > { %577 = vmatprep.mubr.bf16.mxu0 %v998_v36  ;;  %641 = vmatprep.mubr.bf16.mxu1 %v1000_v37 }
  0x4e   : > { %578 = vmatmul.mubr.bf16.gmra.mrb[20].mxu0 %v1002_v38  ;;  %642 = vmatmul.mubr.bf16.gmra.mrb[20].mxu1 %v1003_v39 }
  0x4f   : > { %585 = vmatprep.mubr.bf16.mxu0 %v1004_v40  ;;  %649 = vmatprep.mubr.bf16.mxu1 %v1006_v41 }
  0x56   : > { %586 = vmatmul.mubr.bf16.gmra.mrb[24].mxu0 %v1008_v42  ;;  %650 = vmatmul.mubr.bf16.gmra.mrb[24].mxu1 %v1009_v43 }
  0x57   : > { %593 = vmatprep.mubr.bf16.mxu0 %v1010_v44  ;;  %657 = vmatprep.mubr.bf16.mxu1 %v1012_v45 }
  0x5e   : > { %594 = vmatmul.mubr.bf16.gmra.mrb[28].mxu0 %v1014_v46  ;;  %658 = vmatmul.mubr.bf16.gmra.mrb[28].mxu1 %v1015_v47 }
  0xf9   : > { %v832_v48 = vpop.f32.mrb[0].mxu0  ;;  %v880_v49 = vpop.f32.mrb[0].mxu1 }
  0xfa   : > { %v833_v51 = vpop.f32.mrb[1].mxu0  ;;  %v881_v52 = vpop.f32.mrb[1].mxu1 }
  0xfb   : > { %v834_v53 = vadd.f32 %v833_v51, %v832_v48  ;;  %v882_v54 = vadd.f32 %v881_v52, %v880_v49  ;;  %v835_v55 = vpop.f32.mrb[2].mxu0  ;;  %v883_v56 = vpop.f32.mrb[2].mxu1 }
  0xfc   : > { %v836_v57 = vpop.f32.mrb[3].mxu0  ;;  %v884_v58 = vpop.f32.mrb[3].mxu1 }
  0xfd   : > { %v540_v59 = vadd.f32 %v834_v53, %v1145_v50  ;;  %v604_v60 = vadd.f32 %v882_v54, %v1145_v50  ;;  %v837_v61 = vadd.f32 %v836_v57, %v835_v55  ;;  %v885_v62 = vadd.f32 %v884_v58, %v883_v56 }
  0xff   : > { %666 = vst [vmem:[%s1152_s30] sm:$0xff] %v540_v59  ;;  %682 = vst [vmem:[%s1152_s30 + $0x80] sm:$0xff] %v604_v60  ;;  %v543_v63 = vadd.f32 %v837_v61, %v1145_v50  ;;  %v607_v0 = vadd.f32 %v885_v62, %v1145_v50 }
 0x101   : > { %667 = vst [vmem:[%s1152_s30 + $0x8] sm:$0xff] %v543_v63  ;;  %683 = vst [vmem:[%s1152_s30 + $0x88] sm:$0xff] %v607_v0  ;;  %v838_v1 = vpop.f32.mrb[4].mxu0  ;;  %v886_v2 = vpop.f32.mrb[4].mxu1 }
 0x102   : > { %v839_v3 = vpop.f32.mrb[5].mxu0  ;;  %v887_v4 = vpop.f32.mrb[5].mxu1 }
 0x103   : > { %v840_v5 = vadd.f32 %v839_v3, %v838_v1  ;;  %v888_v6 = vadd.f32 %v887_v4, %v886_v2  ;;  %v841_v7 = vpop.f32.mrb[6].mxu0  ;;  %v889_v8 = vpop.f32.mrb[6].mxu1 }
 0x104   : > { %v842_v9 = vpop.f32.mrb[7].mxu0  ;;  %v890_v10 = vpop.f32.mrb[7].mxu1 }
 0x105   : > { %v548_v11 = vadd.f32 %v840_v5, %v1145_v50  ;;  %v612_v12 = vadd.f32 %v888_v6, %v1145_v50  ;;  %v843_v13 = vadd.f32 %v842_v9, %v841_v7  ;;  %v891_v14 = vadd.f32 %v890_v10, %v889_v8 }
 0x107   : > { %668 = vst [vmem:[%s1152_s30 + $0x10] sm:$0xff] %v548_v11  ;;  %684 = vst [vmem:[%s1152_s30 + $0x90] sm:$0xff] %v612_v12  ;;  %v551_v15 = vadd.f32 %v843_v13, %v1145_v50  ;;  %v615_v16 = vadd.f32 %v891_v14, %v1145_v50 }
 0x109   : > { %669 = vst [vmem:[%s1152_s30 + $0x18] sm:$0xff] %v551_v15  ;;  %685 = vst [vmem:[%s1152_s30 + $0x98] sm:$0xff] %v615_v16  ;;  %v844_v17 = vpop.f32.mrb[8].mxu0  ;;  %v892_v18 = vpop.f32.mrb[8].mxu1 }
 0x10a   : > { %v845_v19 = vpop.f32.mrb[9].mxu0  ;;  %v893_v20 = vpop.f32.mrb[9].mxu1 }
 0x10b   : > { %v846_v21 = vadd.f32 %v845_v19, %v844_v17  ;;  %v894_v22 = vadd.f32 %v893_v20, %v892_v18  ;;  %v847_v23 = vpop.f32.mrb[10].mxu0  ;;  %v895_v24 = vpop.f32.mrb[10].mxu1 }
 0x10c   : > { %v848_v25 = vpop.f32.mrb[11].mxu0  ;;  %v896_v26 = vpop.f32.mrb[11].mxu1 }
 0x10d   : > { %v556_v27 = vadd.f32 %v846_v21, %v1145_v50  ;;  %v620_v28 = vadd.f32 %v894_v22, %v1145_v50  ;;  %v849_v29 = vadd.f32 %v848_v25, %v847_v23  ;;  %v897_v30 = vadd.f32 %v896_v26, %v895_v24 }
 0x10f   : > { %670 = vst [vmem:[%s1152_s30 + $0x20] sm:$0xff] %v556_v27  ;;  %686 = vst [vmem:[%s1152_s30 + $0xa0] sm:$0xff] %v620_v28  ;;  %v559_v31 = vadd.f32 %v849_v29, %v1145_v50  ;;  %v623_v32 = vadd.f32 %v897_v30, %v1145_v50 }
 0x111   : > { %671 = vst [vmem:[%s1152_s30 + $0x28] sm:$0xff] %v559_v31  ;;  %687 = vst [vmem:[%s1152_s30 + $0xa8] sm:$0xff] %v623_v32  ;;  %v850_v33 = vpop.f32.mrb[12].mxu0  ;;  %v898_v34 = vpop.f32.mrb[12].mxu1 }
 0x112   : > { %v851_v35 = vpop.f32.mrb[13].mxu0  ;;  %v899_v36 = vpop.f32.mrb[13].mxu1 }
 0x113   : > { %v852_v37 = vadd.f32 %v851_v35, %v850_v33  ;;  %v900_v38 = vadd.f32 %v899_v36, %v898_v34  ;;  %v853_v39 = vpop.f32.mrb[14].mxu0  ;;  %v901_v40 = vpop.f32.mrb[14].mxu1 }
 0x114   : > { %v854_v41 = vpop.f32.mrb[15].mxu0  ;;  %v902_v42 = vpop.f32.mrb[15].mxu1 }
 0x115   : > { %v564_v43 = vadd.f32 %v852_v37, %v1145_v50  ;;  %v628_v44 = vadd.f32 %v900_v38, %v1145_v50  ;;  %v855_v45 = vadd.f32 %v854_v41, %v853_v39  ;;  %v903_v46 = vadd.f32 %v902_v42, %v901_v40 }
 0x117   : > { %672 = vst [vmem:[%s1152_s30 + $0x30] sm:$0xff] %v564_v43  ;;  %688 = vst [vmem:[%s1152_s30 + $0xb0] sm:$0xff] %v628_v44  ;;  %v567_v47 = vadd.f32 %v855_v45, %v1145_v50  ;;  %v631_v48 = vadd.f32 %v903_v46, %v1145_v50 }
 0x119   : > { %673 = vst [vmem:[%s1152_s30 + $0x38] sm:$0xff] %v567_v47  ;;  %689 = vst [vmem:[%s1152_s30 + $0xb8] sm:$0xff] %v631_v48  ;;  %v856_v49 = vpop.f32.mrb[16].mxu0  ;;  %v904_v51 = vpop.f32.mrb[16].mxu1 }
 0x11a   : > { %v857_v52 = vpop.f32.mrb[17].mxu0  ;;  %v905_v53 = vpop.f32.mrb[17].mxu1 }
 0x11b   : > { %v858_v54 = vadd.f32 %v857_v52, %v856_v49  ;;  %v906_v55 = vadd.f32 %v905_v53, %v904_v51  ;;  %v859_v56 = vpop.f32.mrb[18].mxu0  ;;  %v907_v57 = vpop.f32.mrb[18].mxu1 }
 0x11c   : > { %v860_v58 = vpop.f32.mrb[19].mxu0  ;;  %v908_v59 = vpop.f32.mrb[19].mxu1 }
 0x11d   : > { %v572_v60 = vadd.f32 %v858_v54, %v1145_v50  ;;  %v636_v61 = vadd.f32 %v906_v55, %v1145_v50  ;;  %v861_v62 = vadd.f32 %v860_v58, %v859_v56  ;;  %v909_v63 = vadd.f32 %v908_v59, %v907_v57 }
 0x11f   : > { %674 = vst [vmem:[%s1152_s30 + $0x40] sm:$0xff] %v572_v60  ;;  %690 = vst [vmem:[%s1152_s30 + $0xc0] sm:$0xff] %v636_v61  ;;  %v575_v0 = vadd.f32 %v861_v62, %v1145_v50  ;;  %v639_v1 = vadd.f32 %v909_v63, %v1145_v50 }
 0x121   : > { %675 = vst [vmem:[%s1152_s30 + $0x48] sm:$0xff] %v575_v0  ;;  %691 = vst [vmem:[%s1152_s30 + $0xc8] sm:$0xff] %v639_v1  ;;  %v862_v2 = vpop.f32.mrb[20].mxu0  ;;  %v910_v3 = vpop.f32.mrb[20].mxu1 }
 0x122   : > { %v863_v4 = vpop.f32.mrb[21].mxu0  ;;  %v911_v5 = vpop.f32.mrb[21].mxu1 }
 0x123   : > { %v864_v6 = vadd.f32 %v863_v4, %v862_v2  ;;  %v912_v7 = vadd.f32 %v911_v5, %v910_v3  ;;  %v865_v8 = vpop.f32.mrb[22].mxu0  ;;  %v913_v9 = vpop.f32.mrb[22].mxu1 }
 0x124   : > { %v866_v10 = vpop.f32.mrb[23].mxu0  ;;  %v914_v11 = vpop.f32.mrb[23].mxu1 }
 0x125   : > { %v580_v12 = vadd.f32 %v864_v6, %v1145_v50  ;;  %v644_v13 = vadd.f32 %v912_v7, %v1145_v50  ;;  %v867_v14 = vadd.f32 %v866_v10, %v865_v8  ;;  %v915_v15 = vadd.f32 %v914_v11, %v913_v9 }
 0x127   : > { %676 = vst [vmem:[%s1152_s30 + $0x50] sm:$0xff] %v580_v12  ;;  %692 = vst [vmem:[%s1152_s30 + $0xd0] sm:$0xff] %v644_v13  ;;  %v583_v16 = vadd.f32 %v867_v14, %v1145_v50  ;;  %v647_v17 = vadd.f32 %v915_v15, %v1145_v50 }
 0x129   : > { %677 = vst [vmem:[%s1152_s30 + $0x58] sm:$0xff] %v583_v16  ;;  %693 = vst [vmem:[%s1152_s30 + $0xd8] sm:$0xff] %v647_v17  ;;  %v868_v18 = vpop.f32.mrb[24].mxu0  ;;  %v916_v19 = vpop.f32.mrb[24].mxu1 }
 0x12a   : > { %v869_v20 = vpop.f32.mrb[25].mxu0  ;;  %v917_v21 = vpop.f32.mrb[25].mxu1 }
 0x12b   : > { %v870_v22 = vadd.f32 %v869_v20, %v868_v18  ;;  %v918_v23 = vadd.f32 %v917_v21, %v916_v19  ;;  %v871_v24 = vpop.f32.mrb[26].mxu0  ;;  %v919_v25 = vpop.f32.mrb[26].mxu1 }
 0x12c   : > { %v872_v26 = vpop.f32.mrb[27].mxu0  ;;  %v920_v27 = vpop.f32.mrb[27].mxu1 }
 0x12d   : > { %v588_v28 = vadd.f32 %v870_v22, %v1145_v50  ;;  %v652_v29 = vadd.f32 %v918_v23, %v1145_v50  ;;  %v873_v30 = vadd.f32 %v872_v26, %v871_v24  ;;  %v921_v31 = vadd.f32 %v920_v27, %v919_v25 }
 0x12f   : > { %678 = vst [vmem:[%s1152_s30 + $0x60] sm:$0xff] %v588_v28  ;;  %694 = vst [vmem:[%s1152_s30 + $0xe0] sm:$0xff] %v652_v29  ;;  %v591_v32 = vadd.f32 %v873_v30, %v1145_v50  ;;  %v655_v33 = vadd.f32 %v921_v31, %v1145_v50 }
 0x131   : > { %679 = vst [vmem:[%s1152_s30 + $0x68] sm:$0xff] %v591_v32  ;;  %695 = vst [vmem:[%s1152_s30 + $0xe8] sm:$0xff] %v655_v33  ;;  %v874_v34 = vpop.f32.mrb[28].mxu0  ;;  %v922_v35 = vpop.f32.mrb[28].mxu1 }
 0x132   : > { %v875_v36 = vpop.f32.mrb[29].mxu0  ;;  %v923_v37 = vpop.f32.mrb[29].mxu1 }
 0x133   : > { %v876_v38 = vadd.f32 %v875_v36, %v874_v34  ;;  %v924_v39 = vadd.f32 %v923_v37, %v922_v35  ;;  %v877_v40 = vpop.f32.mrb[30].mxu0  ;;  %v925_v41 = vpop.f32.mrb[30].mxu1 }
 0x134   : > { %v878_v42 = vpop.f32.mrb[31].mxu0  ;;  %v926_v43 = vpop.f32.mrb[31].mxu1 }
 0x135   : > { %v596_v44 = vadd.f32 %v876_v38, %v1145_v50  ;;  %v660_v45 = vadd.f32 %v924_v39, %v1145_v50  ;;  %v879_v46 = vadd.f32 %v878_v42, %v877_v40  ;;  %v927_v47 = vadd.f32 %v926_v43, %v925_v41 }
 0x137   : > { %680 = vst [vmem:[%s1152_s30 + $0x70] sm:$0xff] %v596_v44  ;;  %696 = vst [vmem:[%s1152_s30 + $0xf0] sm:$0xff] %v660_v45  ;;  %v599_v48 = vadd.f32 %v879_v46, %v1145_v50  ;;  %v663_v49 = vadd.f32 %v927_v47, %v1145_v50 }
 0x139   : > { %681 = vst [vmem:[%s1152_s30 + $0x78] sm:$0xff] %v599_v48  ;;  %697 = vst [vmem:[%s1152_s30 + $0xf8] sm:$0xff] %v663_v49 }
 0x13a PF: > { %s13_s12 = sadd.s32 1, %s1022_s12  }
 0x13b   : > { %p10_p4 = scmp.ge.s32.totalorder %s13_s12, 4  }
 0x13d   :  { %12 = sbr.rel (!%p10_p4) target bundleno = 1 (0x1), region = 62 }

</bundles_post_ra>
